<compile_context>
chip_gen: v7x
topology: tpu7x:2x2x1
jax: 0.10.0
libtpu: 0.0.40
codegen_flags: <defaults>
</compile_context>

<pallas_src>
import functools

import jax
import jax.numpy as jnp
from jax.experimental import pallas as pl
from jax.experimental.pallas import tpu as pltpu

# ---- model dims ----
NUM_UNIT = 3            # number of LEConv layers
HIDDEN = 64
F_IN = 4
MLP_HID = 32
N_CLASSES = 3

# ---- fixed per-graph sizes (demo / packing assumption) ----
N_NODES = 16
N_EDGES = 32

# ---- block geometry ----
LANE = 128                              # lane-tile width; hidden carried 128-wide
F_PAD = 8                               # node features zero-padded 4 -> 8
GRAPHS_PER_BLOCK = 8
N_BLK = GRAPHS_PER_BLOCK * N_NODES      # 128 nodes per block  (MXU-friendly M)
E_BLK = GRAPHS_PER_BLOCK * N_EDGES      # 256 edges per block

# ---- packed parameter buffer layouts ----
WCAT_COLS = 3 * LANE                    # 384: [a | b | c], each a full lane tile
# wbuf rows (f32, [WBUF_ROWS, 384]); each LEConv layer gets a 128-row band
ROW_WL1 = NUM_UNIT * LANE               # 384: head Linear(64,32), zero-padded to 128x128
ROW_WL2 = ROW_WL1 + LANE                # 512: head Linear(32,3),  zero-padded to 128x128
WBUF_ROWS = ROW_WL2 + LANE              # 640
# fbuf rows (f32, [FBUF_ROWS, 384])
ROW_WEMB = 0                            # rows 0:8  -> node_emb weight (4x64, zero-padded)
ROW_BEMB = F_PAD                        # row 8     -> node_emb bias
ROW_BCAT = ROW_BEMB + 1                 # rows 9:12 -> per-layer [b1 | 0 | b3]
ROW_BL1 = ROW_BCAT + NUM_UNIT           # row 12    -> head bias 1
ROW_BL2 = ROW_BL1 + 1                   # row 13    -> head bias 2
FBUF_ROWS = 16


def tr3motif_kernel(x_ref, ebuf_ref, ibuf_ref, fbuf_ref, wbuf_ref, out_ref):
    # ---- unpack row-oriented graph structure for this block ----
    src_row = ibuf_ref[0:1, :]                  # [1, E_BLK] block-local source node ids
    dst_row = ibuf_ref[1:2, :]                  # [1, E_BLK] block-local destination ids
    gid_row = ibuf_ref[2:3, 0:N_BLK]            # [1, N_BLK] block-local graph ids
    w_row = ebuf_ref[0:1, :]                    # [1, E_BLK] edge weights (0 for padding)

    # ---- dense block-diagonal adjacency from row-layout one-hots ----
    # d_onehot[i, e] = (dst[e] == i);  s_onehot[j, e] = (src[e] == j)
    n_iota = jax.lax.broadcasted_iota(jnp.int32, (N_BLK, E_BLK), 0)
    d_onehot = (n_iota == dst_row).astype(jnp.float32)
    s_onehot = (n_iota == src_row).astype(jnp.float32)
    # adj[i, j] = sum_e w_e * [dst_e == i] * [src_e == j]   (contraction over edges)
    adj = jax.lax.dot_general(w_row * d_onehot, s_onehot,
                              dimension_numbers=(((1,), (1,)), ((), ())),
                              preferred_element_type=jnp.float32)      # [N_BLK, N_BLK]
    deg = jnp.sum(adj, axis=1, keepdims=True)                          # [N_BLK, 1]
    deg_h = jnp.broadcast_to(deg, (N_BLK, LANE))                       # hoisted broadcast

    # ---- node embedding Linear(4, 64): single (padded K=8) matmul ----
    w_emb = fbuf_ref[ROW_WEMB:ROW_WEMB + F_PAD, 0:LANE]                # [8, 128]
    b_emb = fbuf_ref[ROW_BEMB:ROW_BEMB + 1, 0:LANE]                    # [1, 128]
    h = jnp.dot(x_ref[...], w_emb, preferred_element_type=jnp.float32) + b_emb
    # h: [N_BLK, 128], cols 64:128 are structurally zero throughout.

    # ---- NUM_UNIT x (LEConv -> ReLU), fused lane-aligned [w1|w2|w3] matmul ----
    for i in range(NUM_UNIT):
        wcat = wbuf_ref[i * LANE:(i + 1) * LANE, :]                    # [128, 384]
        bcat = fbuf_ref[ROW_BCAT + i:ROW_BCAT + i + 1, :]              # [1, 384]
        abc = jnp.dot(h, wcat, preferred_element_type=jnp.float32) + bcat
        a = abc[:, 0:LANE]                                             # lin1(x) (aggregated)
        b = abc[:, LANE:2 * LANE]                                      # lin2(x) (scaled by deg)
        c = abc[:, 2 * LANE:3 * LANE]                                  # lin3(x) (self term)
        msg = jnp.dot(adj, a, preferred_element_type=jnp.float32)
        h = jnp.maximum(msg - deg_h * b + c, 0.0)

    # ---- global_mean_pool over each graph in the block ----
    g_iota = jax.lax.broadcasted_iota(jnp.int32, (GRAPHS_PER_BLOCK, N_BLK), 0)
    pool = (g_iota == gid_row).astype(jnp.float32)                     # [G_blk, N_BLK]
    cnt = jnp.maximum(jnp.sum(pool, axis=1, keepdims=True), 1.0)
    g = jnp.dot(pool, h, preferred_element_type=jnp.float32) / cnt     # [G_blk, 128]

    # ---- prediction head: Linear(64,32) -> ReLU -> Linear(32,3), lane-dense out ----
    wl1 = wbuf_ref[ROW_WL1:ROW_WL1 + LANE, 0:LANE]                     # [128, 128]
    wl2 = wbuf_ref[ROW_WL2:ROW_WL2 + LANE, 0:LANE]                     # [128, 128]
    bl1 = fbuf_ref[ROW_BL1:ROW_BL1 + 1, 0:LANE]
    bl2 = fbuf_ref[ROW_BL2:ROW_BL2 + 1, 0:LANE]
    p = jnp.maximum(jnp.dot(g, wl1, preferred_element_type=jnp.float32) + bl1, 0.0)
    out_ref[...] = jnp.dot(p, wl2, preferred_element_type=jnp.float32) + bl2
    # TODO(synk): self.readout = softmax(logits) is module state only; forward returns logits.


def pack_params(params):
    """One-time packing of the 12 parameter tensors into 2 lane-aligned f32 buffers."""
    wbuf = jnp.zeros((WBUF_ROWS, WCAT_COLS), jnp.float32)
    for i in range(NUM_UNIT):
        r = i * LANE
        wbuf = wbuf.at[r:r + HIDDEN, 0:HIDDEN].set(params["w1"][i])
        wbuf = wbuf.at[r:r + HIDDEN, LANE:LANE + HIDDEN].set(params["w2"][i])
        wbuf = wbuf.at[r:r + HIDDEN, 2 * LANE:2 * LANE + HIDDEN].set(params["w3"][i])
    wbuf = wbuf.at[ROW_WL1:ROW_WL1 + HIDDEN, 0:MLP_HID].set(params["wl1"])
    wbuf = wbuf.at[ROW_WL2:ROW_WL2 + MLP_HID, 0:N_CLASSES].set(params["wl2"])

    fbuf = jnp.zeros((FBUF_ROWS, WCAT_COLS), jnp.float32)
    fbuf = fbuf.at[ROW_WEMB:ROW_WEMB + F_IN, 0:HIDDEN].set(params["w_emb"])
    fbuf = fbuf.at[ROW_BEMB, 0:HIDDEN].set(params["b_emb"][0])
    for i in range(NUM_UNIT):
        fbuf = fbuf.at[ROW_BCAT + i, 0:HIDDEN].set(params["b1"][i, 0])
        fbuf = fbuf.at[ROW_BCAT + i, 2 * LANE:2 * LANE + HIDDEN].set(params["b3"][i, 0])
    fbuf = fbuf.at[ROW_BL1, 0:MLP_HID].set(params["bl1"][0])
    fbuf = fbuf.at[ROW_BL2, 0:N_CLASSES].set(params["bl2"][0])
    return {"wbuf": wbuf, "fbuf": fbuf}


@functools.partial(jax.jit, static_argnames=("n_graphs",))
def tr3motif_forward(x, edge_index, edge_attr, batch, packed, n_graphs):
    # Packing assumption (standard PyG batching with fixed-size graphs): nodes/edges are
    # grouped per graph in order, N_NODES nodes and N_EDGES edges per graph.
    # TODO(synk): ragged graphs would need per-block padding (pad edges with weight 0,
    # pad nodes with out-of-range graph id) in this wrapper; the kernel already copes.
    assert n_graphs % GRAPHS_PER_BLOCK == 0
    n_blocks = n_graphs // GRAPHS_PER_BLOCK

    # node features, zero-padded 4 -> 8 columns
    x_pad = jnp.pad(x.astype(jnp.float32), ((0, 0), (0, F_PAD - F_IN)))

    # per-block, block-local, row-oriented graph structure
    node_off = (jnp.arange(n_blocks, dtype=jnp.int32) * N_BLK)[:, None]
    graph_off = (jnp.arange(n_blocks, dtype=jnp.int32) * GRAPHS_PER_BLOCK)[:, None]
    src_local = edge_index[0].reshape(n_blocks, E_BLK).astype(jnp.int32) - node_off
    dst_local = edge_index[1].reshape(n_blocks, E_BLK).astype(jnp.int32) - node_off
    gid_local = batch.reshape(n_blocks, N_BLK).astype(jnp.int32) - graph_off

    ibuf = jnp.zeros((n_blocks, 8, E_BLK), jnp.int32)
    ibuf = ibuf.at[:, 0, :].set(src_local)
    ibuf = ibuf.at[:, 1, :].set(dst_local)
    ibuf = ibuf.at[:, 2, :N_BLK].set(gid_local)
    ebuf = jnp.zeros((n_blocks, 8, E_BLK), jnp.float32)
    ebuf = ebuf.at[:, 0, :].set(edge_attr.reshape(n_blocks, E_BLK))

    out_padded = pl.pallas_call(
        tr3motif_kernel,
        out_shape=jax.ShapeDtypeStruct((n_graphs, LANE), jnp.float32),
        grid_spec=pltpu.PrefetchScalarGridSpec(
            num_scalar_prefetch=0,
            grid=(n_blocks,),
            in_specs=[
                # per-block graph data (pipelined)
                pl.BlockSpec((N_BLK, F_PAD), lambda b: (b, 0)),
                pl.BlockSpec((None, 8, E_BLK), lambda b: (b, 0, 0)),
                pl.BlockSpec((None, 8, E_BLK), lambda b: (b, 0, 0)),
                # packed parameters: constant index_map -> stay VMEM-resident
                pl.BlockSpec((FBUF_ROWS, WCAT_COLS), lambda b: (0, 0)),
                pl.BlockSpec((WBUF_ROWS, WCAT_COLS), lambda b: (0, 0)),
            ],
            out_specs=pl.BlockSpec((GRAPHS_PER_BLOCK, LANE), lambda b: (b, 0)),
        ),
        compiler_params=pltpu.CompilerParams(
            dimension_semantics=("parallel",),        # megacore on v7x, no-op elsewhere
            vmem_limit_bytes=32 * 1024 * 1024,        # explicit; safe on v5e/v6e/v7x
        ),
    )(x_pad, ebuf, ibuf, packed["fbuf"], packed["wbuf"])
    # lane-dense [G, 128] slab written by the kernel; real logits are the first 3 lanes
    return out_padded[:, :N_CLASSES]


def init_params(key):
    ks = jax.random.split(key, 16)
    u = lambda k, shape: jax.random.uniform(k, shape, jnp.float32, -0.1, 0.1)
    return {
        "w_emb": u(ks[0], (F_IN, HIDDEN)),
        "b_emb": u(ks[1], (1, HIDDEN)),
        "w1": u(ks[2], (NUM_UNIT, HIDDEN, HIDDEN)),   # LEConv.lin1 (bias=True, aggregated)
        "b1": u(ks[3], (NUM_UNIT, 1, HIDDEN)),
        "w2": u(ks[4], (NUM_UNIT, HIDDEN, HIDDEN)),   # LEConv.lin2 (bias=False, self*deg)
        "w3": u(ks[5], (NUM_UNIT, HIDDEN, HIDDEN)),   # LEConv.lin3 (bias=True, self)
        "b3": u(ks[6], (NUM_UNIT, 1, HIDDEN)),
        "wl1": u(ks[7], (HIDDEN, MLP_HID)),
        "bl1": u(ks[8], (1, MLP_HID)),
        "wl2": u(ks[9], (MLP_HID, N_CLASSES)),
        "bl2": u(ks[10], (1, N_CLASSES)),
    }


def reference_forward(x, edge_index, edge_attr, batch, params, n_graphs):
    # pure-JAX f32 reference (same math, no Pallas) for the correctness check
    h = x @ params["w_emb"] + params["b_emb"]
    src, dst = edge_index[0], edge_index[1]
    n = x.shape[0]
    adj = jnp.zeros((n, n), jnp.float32).at[dst, src].add(edge_attr)
    deg = adj.sum(axis=1, keepdims=True)
    for i in range(NUM_UNIT):
        a = h @ params["w1"][i] + params["b1"][i]
        b = h @ params["w2"][i]
        c = h @ params["w3"][i] + params["b3"][i]
        h = jnp.maximum(adj @ a - deg * b + c, 0.0)
    onehot = (batch[None, :] == jnp.arange(n_graphs)[:, None]).astype(jnp.float32)
    g = (onehot / jnp.maximum(onehot.sum(1, keepdims=True), 1.0)) @ h
    p = jnp.maximum(g @ params["wl1"] + params["bl1"], 0.0)
    return p @ params["wl2"] + params["bl2"]


if __name__ == "__main__":
    key = jax.random.PRNGKey(0)
    kx, ke1, ke2, kw, kp = jax.random.split(key, 5)

    TOTAL_GRAPHS = 16                       # 2 blocks of 8 graphs -> grid=(2,)
    total_nodes = TOTAL_GRAPHS * N_NODES
    total_edges = TOTAL_GRAPHS * N_EDGES

    # node features [256, 4]
    x = jax.random.normal(kx, (total_nodes, F_IN), jnp.float32)
    # per-graph random directed edges, then shifted to global node ids [2, 512]
    src_l = jax.random.randint(ke1, (TOTAL_GRAPHS, N_EDGES), 0, N_NODES, jnp.int32)
    dst_l = jax.random.randint(ke2, (TOTAL_GRAPHS, N_EDGES), 0, N_NODES, jnp.int32)
    offs = (jnp.arange(TOTAL_GRAPHS, dtype=jnp.int32) * N_NODES)[:, None]
    edge_index = jnp.stack([(src_l + offs).reshape(-1), (dst_l + offs).reshape(-1)])
    edge_attr = jax.random.uniform(kw, (total_edges,), jnp.float32, 0.1, 1.0)
    # batch assignment: 16 nodes per graph, graphs in order
    batch = jnp.repeat(jnp.arange(TOTAL_GRAPHS, dtype=jnp.int32), N_NODES)

    params = init_params(kp)
    packed = pack_params(params)

    pred = tr3motif_forward(x, edge_index, edge_attr, batch, packed, TOTAL_GRAPHS)
    jax.block_until_ready(pred)

    ref = reference_forward(x, edge_index, edge_attr, batch, params, TOTAL_GRAPHS)
    assert pred.shape == (TOTAL_GRAPHS, N_CLASSES)
    # all-f32 matmuls in the kernel; tolerance covers TPU matmul precision differences
    assert jnp.allclose(pred, ref, atol=2e-2, rtol=2e-2), (pred, ref)

    print("KERNEL_OK")
</pallas_src>

<mosaic_0001>
module attributes {stable_mosaic.version = 11 : i64} {
  func.func @tr3motif_kernel(%arg0: i32, %arg1: memref<128x8xf32, #tpu.memory_space<vmem>>, %arg2: memref<1x8x256xf32, #tpu.memory_space<vmem>>, %arg3: memref<1x8x256xi32, #tpu.memory_space<vmem>>, %arg4: memref<16x384xf32, #tpu.memory_space<vmem>>, %arg5: memref<640x384xf32, #tpu.memory_space<vmem>>, %arg6: memref<8x128xf32, #tpu.memory_space<vmem>>) attributes {dimension_semantics = [#tpu.dimension_semantics<parallel>], iteration_bounds = array<i64: 2>, scalar_prefetch = 0 : i64, scratch_operands = 0 : i64, tpu.core_type = #tpu.core_type<tc>, window_params = [{transform_indices = @transform_0, window_bounds = array<i64: 128, 8>}, {transform_indices = @transform_1, window_bounds = array<i64: 1, 8, 256>}, {transform_indices = @transform_2, window_bounds = array<i64: 1, 8, 256>}, {pipeline_mode = #tpu.pipeline_mode<synchronous>, transform_indices = @transform_3, window_bounds = array<i64: 16, 384>}, {pipeline_mode = #tpu.pipeline_mode<synchronous>, transform_indices = @transform_4, window_bounds = array<i64: 640, 384>}, {transform_indices = @transform_5, window_bounds = array<i64: 8, 128>}]} {
    %c0 = arith.constant 0 : index
    %c0_0 = arith.constant 0 : index
    %c0_1 = arith.constant 0 : index
    %0 = vector.load %arg3[%c0, %c0_0, %c0_1] : memref<1x8x256xi32, #tpu.memory_space<vmem>>, vector<1x1x256xi32>
    %1 = vector.shape_cast %0 : vector<1x1x256xi32> to vector<1x256xi32>
    %c0_2 = arith.constant 0 : index
    %c1 = arith.constant 1 : index
    %c0_3 = arith.constant 0 : index
    %2 = vector.load %arg3[%c0_2, %c1, %c0_3] : memref<1x8x256xi32, #tpu.memory_space<vmem>>, vector<1x1x256xi32>
    %3 = vector.shape_cast %2 : vector<1x1x256xi32> to vector<1x256xi32>
    %c0_4 = arith.constant 0 : index
    %c2 = arith.constant 2 : index
    %c0_5 = arith.constant 0 : index
    %4 = vector.load %arg3[%c0_4, %c2, %c0_5] : memref<1x8x256xi32, #tpu.memory_space<vmem>>, vector<1x1x128xi32>
    %5 = vector.shape_cast %4 : vector<1x1x128xi32> to vector<1x128xi32>
    %c0_6 = arith.constant 0 : index
    %c0_7 = arith.constant 0 : index
    %c0_8 = arith.constant 0 : index
    %6 = vector.load %arg2[%c0_6, %c0_7, %c0_8] : memref<1x8x256xf32, #tpu.memory_space<vmem>>, vector<1x1x256xf32>
    %7 = vector.shape_cast %6 : vector<1x1x256xf32> to vector<1x256xf32>
    %8 = tpu.iota {dimensions = array<i32: 0>} : vector<128x256xi32>
    %9 = vector.broadcast %3 : vector<1x256xi32> to vector<128x256xi32>
    %10 = arith.cmpi eq, %8, %9 : vector<128x256xi32>
    %11 = arith.extui %10 : vector<128x256xi1> to vector<128x256xi32>
    %12 = arith.sitofp %11 : vector<128x256xi32> to vector<128x256xf32>
    %13 = vector.broadcast %1 : vector<1x256xi32> to vector<128x256xi32>
    %14 = arith.cmpi eq, %8, %13 : vector<128x256xi32>
    %15 = arith.extui %14 : vector<128x256xi1> to vector<128x256xi32>
    %16 = arith.sitofp %15 : vector<128x256xi32> to vector<128x256xf32>
    %17 = vector.broadcast %7 : vector<1x256xf32> to vector<128x256xf32>
    %18 = arith.mulf %17, %12 : vector<128x256xf32>
    %cst = arith.constant dense<0.000000e+00> : vector<128x128xf32>
    %19 = tpu.matmul %18, %16, %cst {dimension_numbers = #tpu.dot_dimension_numbers<[1], [1], [0], [0], [0, 0, 1, 0], [], []>} : vector<128x256xf32>, vector<128x256xf32>, vector<128x128xf32> -> vector<128x128xf32>
    %cst_9 = arith.constant dense<0.000000e+00> : vector<128xf32>
    %20 = vector.multi_reduction <add>, %19, %cst_9 [1] : vector<128x128xf32> to vector<128xf32>
    %21 = vector.shape_cast %20 : vector<128xf32> to vector<128x1xf32>
    %22 = vector.shape_cast %21 : vector<128x1xf32> to vector<128x1xf32>
    %23 = vector.broadcast %22 : vector<128x1xf32> to vector<128x128xf32>
    %c0_10 = arith.constant 0 : index
    %c0_11 = arith.constant 0 : index
    %24 = vector.load %arg4[%c0_10, %c0_11] : memref<16x384xf32, #tpu.memory_space<vmem>>, vector<8x128xf32>
    %c8 = arith.constant 8 : index
    %c0_12 = arith.constant 0 : index
    %25 = vector.load %arg4[%c8, %c0_12] : memref<16x384xf32, #tpu.memory_space<vmem>>, vector<1x128xf32>
    %c0_13 = arith.constant 0 : index
    %c0_14 = arith.constant 0 : index
    %26 = vector.load %arg1[%c0_13, %c0_14] : memref<128x8xf32, #tpu.memory_space<vmem>>, vector<128x8xf32>
    %cst_15 = arith.constant dense<0.000000e+00> : vector<128x128xf32>
    %27 = tpu.matmul %26, %24, %cst_15 {dimension_numbers = #tpu.dot_dimension_numbers<[1], [0], [0], [1], [0, 0, 1, 1], [], []>} : vector<128x8xf32>, vector<8x128xf32>, vector<128x128xf32> -> vector<128x128xf32>
    %28 = vector.broadcast %25 : vector<1x128xf32> to vector<128x128xf32>
    %29 = arith.addf %27, %28 : vector<128x128xf32>
    %c0_16 = arith.constant 0 : index
    %c0_17 = arith.constant 0 : index
    %30 = vector.load %arg5[%c0_16, %c0_17] : memref<640x384xf32, #tpu.memory_space<vmem>>, vector<128x384xf32>
    %c9 = arith.constant 9 : index
    %c0_18 = arith.constant 0 : index
    %31 = vector.load %arg4[%c9, %c0_18] : memref<16x384xf32, #tpu.memory_space<vmem>>, vector<1x384xf32>
    %cst_19 = arith.constant dense<0.000000e+00> : vector<128x384xf32>
    %32 = tpu.matmul %29, %30, %cst_19 {dimension_numbers = #tpu.dot_dimension_numbers<[1], [0], [0], [1], [0, 0, 1, 1], [], []>} : vector<128x128xf32>, vector<128x384xf32>, vector<128x384xf32> -> vector<128x384xf32>
    %33 = vector.broadcast %31 : vector<1x384xf32> to vector<128x384xf32>
    %34 = arith.addf %32, %33 : vector<128x384xf32>
    %35 = vector.extract_strided_slice %34 {offsets = [0, 0], sizes = [128, 128], strides = [1, 1]} : vector<128x384xf32> to vector<128x128xf32>
    %36 = vector.extract_strided_slice %34 {offsets = [0, 128], sizes = [128, 128], strides = [1, 1]} : vector<128x384xf32> to vector<128x128xf32>
    %37 = vector.extract_strided_slice %34 {offsets = [0, 256], sizes = [128, 128], strides = [1, 1]} : vector<128x384xf32> to vector<128x128xf32>
    %cst_20 = arith.constant dense<0.000000e+00> : vector<128x128xf32>
    %38 = tpu.matmul %19, %35, %cst_20 {dimension_numbers = #tpu.dot_dimension_numbers<[1], [0], [0], [1], [0, 0, 1, 1], [], []>} : vector<128x128xf32>, vector<128x128xf32>, vector<128x128xf32> -> vector<128x128xf32>
    %39 = arith.mulf %23, %36 : vector<128x128xf32>
    %40 = arith.subf %38, %39 : vector<128x128xf32>
    %41 = arith.addf %40, %37 : vector<128x128xf32>
    %cst_21 = arith.constant 0.000000e+00 : f32
    %42 = vector.broadcast %cst_21 : f32 to vector<128x128xf32>
    %43 = arith.maximumf %41, %42 : vector<128x128xf32>
    %c128 = arith.constant 128 : index
    %c0_22 = arith.constant 0 : index
    %44 = vector.load %arg5[%c128, %c0_22] : memref<640x384xf32, #tpu.memory_space<vmem>>, vector<128x384xf32>
    %c10 = arith.constant 10 : index
    %c0_23 = arith.constant 0 : index
    %45 = vector.load %arg4[%c10, %c0_23] : memref<16x384xf32, #tpu.memory_space<vmem>>, vector<1x384xf32>
    %cst_24 = arith.constant dense<0.000000e+00> : vector<128x384xf32>
    %46 = tpu.matmul %43, %44, %cst_24 {dimension_numbers = #tpu.dot_dimension_numbers<[1], [0], [0], [1], [0, 0, 1, 1], [], []>} : vector<128x128xf32>, vector<128x384xf32>, vector<128x384xf32> -> vector<128x384xf32>
    %47 = vector.broadcast %45 : vector<1x384xf32> to vector<128x384xf32>
    %48 = arith.addf %46, %47 : vector<128x384xf32>
    %49 = vector.extract_strided_slice %48 {offsets = [0, 0], sizes = [128, 128], strides = [1, 1]} : vector<128x384xf32> to vector<128x128xf32>
    %50 = vector.extract_strided_slice %48 {offsets = [0, 128], sizes = [128, 128], strides = [1, 1]} : vector<128x384xf32> to vector<128x128xf32>
    %51 = vector.extract_strided_slice %48 {offsets = [0, 256], sizes = [128, 128], strides = [1, 1]} : vector<128x384xf32> to vector<128x128xf32>
    %cst_25 = arith.constant dense<0.000000e+00> : vector<128x128xf32>
    %52 = tpu.matmul %19, %49, %cst_25 {dimension_numbers = #tpu.dot_dimension_numbers<[1], [0], [0], [1], [0, 0, 1, 1], [], []>} : vector<128x128xf32>, vector<128x128xf32>, vector<128x128xf32> -> vector<128x128xf32>
    %53 = arith.mulf %23, %50 : vector<128x128xf32>
    %54 = arith.subf %52, %53 : vector<128x128xf32>
    %55 = arith.addf %54, %51 : vector<128x128xf32>
    %cst_26 = arith.constant 0.000000e+00 : f32
    %56 = vector.broadcast %cst_26 : f32 to vector<128x128xf32>
    %57 = arith.maximumf %55, %56 : vector<128x128xf32>
    %c256 = arith.constant 256 : index
    %c0_27 = arith.constant 0 : index
    %58 = vector.load %arg5[%c256, %c0_27] : memref<640x384xf32, #tpu.memory_space<vmem>>, vector<128x384xf32>
    %c11 = arith.constant 11 : index
    %c0_28 = arith.constant 0 : index
    %59 = vector.load %arg4[%c11, %c0_28] : memref<16x384xf32, #tpu.memory_space<vmem>>, vector<1x384xf32>
    %cst_29 = arith.constant dense<0.000000e+00> : vector<128x384xf32>
    %60 = tpu.matmul %57, %58, %cst_29 {dimension_numbers = #tpu.dot_dimension_numbers<[1], [0], [0], [1], [0, 0, 1, 1], [], []>} : vector<128x128xf32>, vector<128x384xf32>, vector<128x384xf32> -> vector<128x384xf32>
    %61 = vector.broadcast %59 : vector<1x384xf32> to vector<128x384xf32>
    %62 = arith.addf %60, %61 : vector<128x384xf32>
    %63 = vector.extract_strided_slice %62 {offsets = [0, 0], sizes = [128, 128], strides = [1, 1]} : vector<128x384xf32> to vector<128x128xf32>
    %64 = vector.extract_strided_slice %62 {offsets = [0, 128], sizes = [128, 128], strides = [1, 1]} : vector<128x384xf32> to vector<128x128xf32>
    %65 = vector.extract_strided_slice %62 {offsets = [0, 256], sizes = [128, 128], strides = [1, 1]} : vector<128x384xf32> to vector<128x128xf32>
    %cst_30 = arith.constant dense<0.000000e+00> : vector<128x128xf32>
    %66 = tpu.matmul %19, %63, %cst_30 {dimension_numbers = #tpu.dot_dimension_numbers<[1], [0], [0], [1], [0, 0, 1, 1], [], []>} : vector<128x128xf32>, vector<128x128xf32>, vector<128x128xf32> -> vector<128x128xf32>
    %67 = arith.mulf %23, %64 : vector<128x128xf32>
    %68 = arith.subf %66, %67 : vector<128x128xf32>
    %69 = arith.addf %68, %65 : vector<128x128xf32>
    %cst_31 = arith.constant 0.000000e+00 : f32
    %70 = vector.broadcast %cst_31 : f32 to vector<128x128xf32>
    %71 = arith.maximumf %69, %70 : vector<128x128xf32>
    %72 = tpu.iota {dimensions = array<i32: 0>} : vector<8x128xi32>
    %73 = vector.broadcast %5 : vector<1x128xi32> to vector<8x128xi32>
    %74 = arith.cmpi eq, %72, %73 : vector<8x128xi32>
    %75 = arith.extui %74 : vector<8x128xi1> to vector<8x128xi32>
    %76 = arith.sitofp %75 : vector<8x128xi32> to vector<8x128xf32>
    %cst_32 = arith.constant dense<0.000000e+00> : vector<8xf32>
    %77 = vector.multi_reduction <add>, %76, %cst_32 [1] : vector<8x128xf32> to vector<8xf32>
    %78 = vector.shape_cast %77 : vector<8xf32> to vector<8x1xf32>
    %cst_33 = arith.constant 1.000000e+00 : f32
    %79 = vector.broadcast %cst_33 : f32 to vector<8x1xf32>
    %80 = arith.maximumf %78, %79 : vector<8x1xf32>
    %cst_34 = arith.constant dense<0.000000e+00> : vector<8x128xf32>
    %81 = tpu.matmul %76, %71, %cst_34 {dimension_numbers = #tpu.dot_dimension_numbers<[1], [0], [0], [1], [0, 0, 1, 1], [], []>} : vector<8x128xf32>, vector<128x128xf32>, vector<8x128xf32> -> vector<8x128xf32>
    %82 = vector.broadcast %80 : vector<8x1xf32> to vector<8x128xf32>
    %83 = arith.divf %81, %82 : vector<8x128xf32>
    %c384 = arith.constant 384 : index
    %c0_35 = arith.constant 0 : index
    %84 = vector.load %arg5[%c384, %c0_35] : memref<640x384xf32, #tpu.memory_space<vmem>>, vector<128x128xf32>
    %c512 = arith.constant 512 : index
    %c0_36 = arith.constant 0 : index
    %85 = vector.load %arg5[%c512, %c0_36] : memref<640x384xf32, #tpu.memory_space<vmem>>, vector<128x128xf32>
    %c12 = arith.constant 12 : index
    %c0_37 = arith.constant 0 : index
    %86 = vector.load %arg4[%c12, %c0_37] : memref<16x384xf32, #tpu.memory_space<vmem>>, vector<1x128xf32>
    %c13 = arith.constant 13 : index
    %c0_38 = arith.constant 0 : index
    %87 = vector.load %arg4[%c13, %c0_38] : memref<16x384xf32, #tpu.memory_space<vmem>>, vector<1x128xf32>
    %cst_39 = arith.constant dense<0.000000e+00> : vector<8x128xf32>
    %88 = tpu.matmul %83, %84, %cst_39 {dimension_numbers = #tpu.dot_dimension_numbers<[1], [0], [0], [1], [0, 0, 1, 1], [], []>} : vector<8x128xf32>, vector<128x128xf32>, vector<8x128xf32> -> vector<8x128xf32>
    %89 = vector.broadcast %86 : vector<1x128xf32> to vector<8x128xf32>
    %90 = arith.addf %88, %89 : vector<8x128xf32>
    %cst_40 = arith.constant 0.000000e+00 : f32
    %91 = vector.broadcast %cst_40 : f32 to vector<8x128xf32>
    %92 = arith.maximumf %90, %91 : vector<8x128xf32>
    %cst_41 = arith.constant dense<0.000000e+00> : vector<8x128xf32>
    %93 = tpu.matmul %92, %85, %cst_41 {dimension_numbers = #tpu.dot_dimension_numbers<[1], [0], [0], [1], [0, 0, 1, 1], [], []>} : vector<8x128xf32>, vector<128x128xf32>, vector<8x128xf32> -> vector<8x128xf32>
    %94 = vector.broadcast %87 : vector<1x128xf32> to vector<8x128xf32>
    %95 = arith.addf %93, %94 : vector<8x128xf32>
    %c0_42 = arith.constant 0 : index
    %c0_43 = arith.constant 0 : index
    %96 = vector.load %arg6[%c0_42, %c0_43] : memref<8x128xf32, #tpu.memory_space<vmem>>, vector<8x128xf32>
    tpu.vector_store %arg6[%c0_42, %c0_43], %95 {strides = array<i32>} : memref<8x128xf32, #tpu.memory_space<vmem>>, vector<8x128xf32>,
    return
  }
  func.func @transform_0(%arg0: i32) -> (i32, i32) {
    %c0_i32 = arith.constant 0 : i32
    %c0_i32_0 = arith.constant 0 : i32
    return %arg0, %c0_i32 : i32, i32
  }
  func.func @transform_1(%arg0: i32) -> (i32, i32, i32) {
    %c0_i32 = arith.constant 0 : i32
    %c0_i32_0 = arith.constant 0 : i32
    %c0_i32_1 = arith.constant 0 : i32
    return %arg0, %c0_i32, %c0_i32_0 : i32, i32, i32
  }
  func.func @transform_2(%arg0: i32) -> (i32, i32, i32) {
    %c0_i32 = arith.constant 0 : i32
    %c0_i32_0 = arith.constant 0 : i32
    %c0_i32_1 = arith.constant 0 : i32
    return %arg0, %c0_i32, %c0_i32_0 : i32, i32, i32
  }
  func.func @transform_3(%arg0: i32) -> (i32, i32) {
    %c0_i32 = arith.constant 0 : i32
    %c0_i32_0 = arith.constant 0 : i32
    %c0_i32_1 = arith.constant 0 : i32
    return %c0_i32, %c0_i32_0 : i32, i32
  }
  func.func @transform_4(%arg0: i32) -> (i32, i32) {
    %c0_i32 = arith.constant 0 : i32
    %c0_i32_0 = arith.constant 0 : i32
    %c0_i32_1 = arith.constant 0 : i32
    return %c0_i32, %c0_i32_0 : i32, i32
  }
  func.func @transform_5(%arg0: i32) -> (i32, i32) {
    %c0_i32 = arith.constant 0 : i32
    %c0_i32_0 = arith.constant 0 : i32
    return %arg0, %c0_i32 : i32, i32
  }
}

</mosaic_0001>

<bundles_post_ra>
// kernel: tr3motif_forward.1
= control target key start
LH: loop header
LB: loop body
LE: loop exit
PB: predicated region body
PF: predicated region fallthrough
CT: control target
= control target key end

     0   :  { %10 = vsyncpa [#allocation3], 0  ;;  %s4389_s18 = smov 0   ;;  %s5667_s0 = inlined_call_operand.vmem [shape: f32[256,8], index: 0, kind: input, shape index: {}]   ;;  %s5668_s1 = inlined_call_operand.vmem [shape: f32[2,8,256], index: 1, kind: input, shape index: {}]   ;;  %s5669_s2 = inlined_call_operand.vmem [shape: s32[2,8,256], index: 2, kind: input, shape index: {}]   ;;  %s5670_s3 = inlined_call_operand.vmem [shape: f32[16,384], index: 3, kind: input, shape index: {}]   ;;  %s5671_s4 = inlined_call_operand.hbm [shape: f32[640,384], index: 4, kind: input, shape index: {}]   ;;  %s5672_s5 = inlined_call_operand.vmem [shape: f32[16,128], index: 5, kind: output, shape index: {}]  }
   0x1 LB: > { %s4395_s19 = sadd.s32 4294967295, %s4349_s18   ;;  %p3030_p0 = scmp.ge.s32.totalorder %s4349_s18, 1  ;;  %s4349_s18 = sphi %s4389_s18, %s16_s18  }
   0x2   : > { %p167_p1 = scmp.lt.s32.totalorder %s4349_s18, 3  ;;  %s4351_s20 = smov [#allocation2]  }
   0x3   : > { %s182_s21 = sshll.u32 %s4351_s20, 4  ;;  %p5673_p3 = scmp.eq.s32.totalorder %s4395_s19, 0  ;;  %s183_s21 = int_to_ptr.vmem [resolvable:$true] %s182_s21 }
   0x4   : > { %p4399_p2 = pnand %p3030_p0, %p167_p1  ;;  %s4311_s26 = scalar_lea.hbm %s5671_s4, 30720 }
   0x5   : > { %p4312_p6 = scmp.ne.s32.totalorder %s5671_s4, %s4311_s26  ;;  %p4318_p10 = scmp.lt.u32.totalorder %s4311_s26, %s5671_s4 }
   0x6   : > { %s5705_s22 = scalar_select %p4399_p2, 1, 0 }
   0x7   : > { %p4287_p4 = pneg %p4399_p2 }
   0x9   : > { %p4408_p5 = pnand %p5673_p3, %p4287_p4 }
   0xb   : > { %p4313_p7 = pneg %p4408_p5 }
   0xd   : > { %p4314_p8 = pnand %p4313_p7, %p4312_p6 }
   0xf   : > { %p4315_p9 = pneg %p4314_p8 }
  0x11   : > { %p4320_p11 = pnand %p4318_p10, %p4315_p9 }
  0x13   : > { %4323 = shalt.err (!%p4320_p11)
}
  0x14   : > { %s4324_s6 = scalar_lea.vmem %s183_s21, 30720  ;;  %p4332_p1 = scmp.lt.s32.totalorder %s183_s21, %s183_s21 }
  0x15   : > { %p4325_p12 = scmp.ne.s32.totalorder %s183_s21, %s4324_s6  ;;  %p4333_p4 = scmp.lt.s32.totalorder %s4324_s6, %s4324_s6 }
  0x17   : > { %p4327_p13 = pnand %p4325_p12, %p4313_p7  ;;  %p4334_p3 = por %p4333_p4, %p4332_p1 }
  0x19   : > { %p4328_p0 = pneg %p4327_p13 }
  0x1b   : > { %p4335_p2 = pnand %p4334_p3, %p4328_p0 }
  0x1d   : > { %4338 = shalt.err (!%p4335_p2)
}
  0x1e   : > { %s4352_s7 = smov 384   ;;  %s4353_s8 = smov 24  }
  0x1f   : > { %4290 = dma.hbm_to_vmem [thread:$0]  (!%p4408_p5), %s5671_s4, 30720, %s183_s21, [#allocation3], %s4352_s7, %s4352_s7, %s4353_s8  }
  0x20   : > { %p5707_p6 = scmp.ne.s32.totalorder %s5705_s22, 0 }
  0x22   : > { %223 = sbr.rel (%p5707_p6) target bundleno = 2442 (0x98a), region = 40 }
  0x29   : > { %p5708_p8 = scmp.eq.s32.totalorder %s4395_s19, 0 }
  0x2b   : > { %4344 = dma.done.wait (%p5708_p8), [#allocation3], 30720   ;;  %p5709_p7 = pmov %p5708_p8 }
  0x2c   : > { %s3035_s11 = sshll.u32 %s4395_s19, 4  ;;  %p266_p2 = scmp.lt.s32.totalorder %s4395_s19, 1  ;;  %v285_v0 = vlaneseq  ;;  %vm748_vm0 = vcmask 64512   ;;  %v730_v4 = vld [vmem:[%s5670_s3] sm:$0xff]  ;;  %v4354_v16 = vmov 1.0|1.0  }
  0x2d   : > { %4346 = vsyncadd (%p5709_p7), [#allocation3], 4294936576  ;;  %p261_p3 = scmp.lt.s32.totalorder %s3035_s11, 31  ;;  %3424 = vmatprep.subr.mxu1 %v730_v4  ;;  %v943_v23 = vld [vmem:[#allocation2 + $0x8] sm:$0xff]  ;;  %v946_v24 = vld [vmem:[#allocation2 + $0x20] sm:$0xff]  ;;  %v5675_v35 = vmov 0.0  }
  0x2e   : > { %s5774_s19 = smov (!%p266_p2, %s4395_s19), 1  ;;  %v4439_v1 = vshrl.u32 %v285_v0, 7  ;;  %3425 = vmatpush3.msra.mxu1 %v730_v4  ;;  %v942_v25 = vld [vmem:[#allocation2] sm:$0xff]  ;;  %v945_v26 = vld [vmem:[#allocation2 + $0x18] sm:$0xff]  ;;  %v3923_v31 = vpack.c.bf16 %v946_v24, %v943_v23  ;;  %v952_v23 = vld [vmem:[#allocation2 + $0x50] sm:$0xff] }
  0x2f   : > { %s5776_s11 = smov (!%p261_p3, %s3035_s11), 31  ;;  %s3162_s12 = sshll.u32 %s5774_s19, 4  ;;  %v3925_v34 = vpack.c.bf16 %v945_v26, %v942_v25  ;;  %v948_v24 = vld [vmem:[#allocation2 + $0x30] sm:$0xff]  ;;  %v951_v25 = vld [vmem:[#allocation2 + $0x48] sm:$0xff] }
  0x30   : > { %5710 = vst [vmem:[#allocation5_spill] sm:$0xff] %v4439_v1  ;;  %s3036_s13 = sshll.u32 %s5776_s11, 3  ;;  %s4447_s16 = scalar_lea.vmem %s5669_s2, %s3162_s12  ;;  %v4450_v2 = vsub.s32 1, %v4439_v1  ;;  %v4453_v3 = vsub.s32 0, %v4439_v1  ;;  %v4466_v7 = vadd.s32 8, %v4439_v1  ;;  %v4472_v10 = vadd.s32 16, %v4439_v1  ;;  %3924 = vmatprep.subr.bf16.mxu1 %v3923_v31 }
  0x31   : > { %s4458_s21 = scalar_lea.vmem %s5667_s0, %s3036_s13  ;;  %v280_v9 = vld [vmem:[%s4447_s16] ss:$8 sm:$0x3]  ;;  %v4475_v11 = vadd.s32 24, %v4439_v1  ;;  %v4501_v17 = vadd.s32 32, %v4439_v1  ;;  %v4504_v18 = vadd.s32 40, %v4439_v1  ;;  %s270_s26 = scalar_lea.vmem %s5668_s1, %s3162_s12 }
  0x32   : > { %5711 = vst [vmem:[#allocation6_spill] sm:$0xff] %v4453_v3  ;;  %v732_v5 = vld [vmem:[%s4458_s21] sm:$0xff]  ;;  %v733_v6 = vld [vmem:[%s4458_s21 + $0x8] sm:$0xff]  ;;  %v734_v8 = vld [vmem:[%s4458_s21 + $0x10] sm:$0xff]  ;;  %v4478_v12 = vrot.slane %v280_v9, %v4450_v2  ;;  %v4481_v13 = vrot.slane %v280_v9, %v4453_v3  ;;  %v4543_v32 = vadd.s32 48, %v4439_v1  ;;  %v4546_v33 = vadd.s32 56, %v4439_v1 }
  0x33   : > { %3426 = vmatprep.mubr.msk.f32.mxu1 %vm748_vm0, %v732_v5  ;;  %v735_v14 = vld [vmem:[%s4458_s21 + $0x18] sm:$0xff]  ;;  %v736_v15 = vld [vmem:[%s4458_s21 + $0x20] sm:$0xff]  ;;  %v737_v19 = vld [vmem:[%s4458_s21 + $0x28] sm:$0xff]  ;;  %v4577_v44 = vadd.s32 64, %v4439_v1  ;;  %v4580_v45 = vadd.s32 72, %v4439_v1  ;;  %v4618_v54 = vadd.s32 80, %v4439_v1 }
  0x34   : > { %3427 = vmatmul.mubr.msk.f32.vlgmr.msra.gmra.mrb[0].mxu1 %vm748_vm0, %v733_v6  ;;  %vm415_vm1 = vcmp.eq.s32.totalorder %v4439_v1, %v4478_v12  ;;  %vm417_vm2 = vcmp.eq.s32.totalorder %v4466_v7, %v4478_v12  ;;  %vm414_vm3 = vcmp.eq.s32.totalorder %v4439_v1, %v4481_v13  ;;  %vm416_vm4 = vcmp.eq.s32.totalorder %v4466_v7, %v4481_v13  ;;  %v738_v20 = vld [vmem:[%s4458_s21 + $0x30] sm:$0xff]  ;;  %v4522_v21 = vld [vmem:[%s4447_s16 + $0x1] ss:$8 sm:$0x3]  ;;  %v739_v27 = vld [vmem:[%s4458_s21 + $0x38] sm:$0xff]  ;;  %s3041_s12 = sshll.u32 %s5774_s19, 3 }
  0x35   : > { %3429 = vmatprep.mubr.msk.f32.mxu1 %vm748_vm0, %v734_v8  ;;  %vm3891_vm5 = vmpackc.low %vm417_vm2, %vm415_vm1  ;;  %vm419_vm6 = vcmp.eq.s32.totalorder %v4472_v10, %v4478_v12  ;;  %vm421_vm7 = vcmp.eq.s32.totalorder %v4475_v11, %v4478_v12  ;;  %vm418_vm10 = vcmp.eq.s32.totalorder %v4472_v10, %v4481_v13  ;;  %vm420_vm11 = vcmp.eq.s32.totalorder %v4475_v11, %v4481_v13  ;;  %v4528_v22 = vld [vmem:[%s270_s26] ss:$8 sm:$0x3]  ;;  %v742_v39 = vld [vmem:[%s4458_s21 + $0x50] sm:$0xff]  ;;  %s279_s17 = scalar_lea.vmem %s5672_s5, %s3041_s12 }
  0x36   : > { %3892 = vmatprep.subr.msk.bf16.mxu0 %vm3891_vm5, %v4354_v16  ;;  %vm3893_vm8 = vmpackc.low %vm416_vm4, %vm414_vm3  ;;  %vm423_vm12 = vcmp.eq.s32.totalorder %v4501_v17, %v4478_v12  ;;  %vm425_vm13 = vcmp.eq.s32.totalorder %v4504_v18, %v4478_v12  ;;  %v4535_v28 = vrot.slane %v4522_v21, %v4450_v2  ;;  %v740_v29 = vld [vmem:[%s4458_s21 + $0x40] sm:$0xff]  ;;  %v4540_v30 = vrot.slane %v4528_v22, %v4450_v2  ;;  %v741_v37 = vld [vmem:[%s4458_s21 + $0x48] sm:$0xff] }
  0x37   : > { %3894 = vmatpush1.bf16.xpose.msk.msra.mxu0 %vm3893_vm8, %v4354_v16  ;;  %vm3895_vm9 = vmpackc.low %vm421_vm7, %vm419_vm6  ;;  %vm422_vm2 = vcmp.eq.s32.totalorder %v4501_v17, %v4481_v13  ;;  %vm424_vm3 = vcmp.eq.s32.totalorder %v4504_v18, %v4481_v13  ;;  %vm427_vm4 = vcmp.eq.s32.totalorder %v4543_v32, %v4478_v12  ;;  %vm429_vm5 = vcmp.eq.s32.totalorder %v4546_v33, %v4478_v12  ;;  %v743_v40 = vld [vmem:[%s4458_s21 + $0x58] sm:$0xff]  ;;  %v744_v41 = vld [vmem:[%s4458_s21 + $0x60] sm:$0xff] }
  0x38   : > { %3430 = vmatmul.mubr.msk.f32.gmra.mrb[2].mxu1 %vm748_vm0, %v735_v14  ;;  %3896 = vmatprep.subr.msk.bf16.mxu0 %vm3895_vm9, %v4354_v16  ;;  %vm3897_vm14 = vmpackc.low %vm420_vm11, %vm418_vm10  ;;  %vm311_vm1 = vcmp.eq.s32.totalorder %v4439_v1, %v4535_v28  ;;  %vm319_vm7 = vcmp.eq.s32.totalorder %v4501_v17, %v4535_v28  ;;  %vm321_vm8 = vcmp.eq.s32.totalorder %v4504_v18, %v4535_v28  ;;  %v745_v48 = vld [vmem:[%s4458_s21 + $0x68] sm:$0xff]  ;;  %v746_v50 = vld [vmem:[%s4458_s21 + $0x70] sm:$0xff]  ;;  %v4624_v56 = vadd.s32 88, %v4439_v1 }
  0x39   : > { %3432 = vmatprep.mubr.msk.f32.mxu1 %vm748_vm0, %v736_v15  ;;  %vm3899_vm15 = vmpackc.low %vm425_vm13, %vm423_vm12  ;;  %v3044_v36 = vsel %vm311_vm1, 1.0, %v5675_v35  ;;  %3926 = vmatpush1.bf16.msra.mxu1 %v3925_v34  ;;  %v3052_v42 = vsel %vm319_vm7, 1.0, %v5675_v35  ;;  %v3054_v43 = vsel %vm321_vm8, 1.0, %v5675_v35  ;;  %vm323_vm10 = vcmp.eq.s32.totalorder %v4543_v32, %v4535_v28  ;;  %v747_v57 = vld [vmem:[%s4458_s21 + $0x78] sm:$0xff] }
  0x3a   : > { %v522_v38 = vmul.f32 %v3044_v36, %v4540_v30  ;;  %vm3901_vm6 = vmpackc.low %vm424_vm3, %vm422_vm2  ;;  %v4583_v46 = vmul.f32 %v3052_v42, %v4540_v30  ;;  %v4586_v47 = vmul.f32 %v3054_v43, %v4540_v30  ;;  %v3056_v49 = vsel %vm323_vm10, 1.0, %v5675_v35  ;;  %v961_v42 = vld [vmem:[#allocation2 + $0x98] sm:$0xff]  ;;  %v964_v43 = vld [vmem:[#allocation2 + $0xb0] sm:$0xff] }
  0x3b   : > { %vm3903_vm9 = vmpackc.low %vm429_vm5, %vm427_vm4  ;;  %vm325_vm11 = vcmp.eq.s32.totalorder %v4546_v33, %v4535_v28  ;;  %vm426_vm12 = vcmp.eq.s32.totalorder %v4543_v32, %v4481_v13  ;;  %vm428_vm13 = vcmp.eq.s32.totalorder %v4546_v33, %v4481_v13  ;;  %v4604_v51 = vmul.f32 %v3056_v49, %v4540_v30 }
  0x3c   : > { %3433 = vmatmul.mubr.msk.f32.gmra.mrb[4].mxu1 %vm748_vm0, %v737_v19  ;;  %617 = vmatprep.mubr.f32.mxu0 %v522_v38  ;;  %v3058_v52 = vsel %vm325_vm11, 1.0, %v5675_v35  ;;  %vm327_vm1 = vcmp.eq.s32.totalorder %v4577_v44, %v4535_v28  ;;  %vm329_vm2 = vcmp.eq.s32.totalorder %v4580_v45, %v4535_v28  ;;  %vm3905_vm3 = vmpackc.low %vm428_vm13, %vm426_vm12  ;;  %vm331_vm5 = vcmp.eq.s32.totalorder %v4618_v54, %v4535_v28  ;;  %v949_v19 = vld [vmem:[#allocation2 + $0x38] sm:$0xff] }
  0x3d   : > { %3435 = vmatprep.mubr.msk.f32.mxu1 %vm748_vm0, %v738_v20  ;;  %v4612_v53 = vmul.f32 %v3058_v52, %v4540_v30  ;;  %v3060_v55 = vsel %vm327_vm1, 1.0, %v5675_v35  ;;  %v3062_v59 = vsel %vm329_vm2, 1.0, %v5675_v35  ;;  %v4638_v61 = vadd.s32 96, %v4439_v1  ;;  %v963_v52 = vld [vmem:[#allocation2 + $0xa8] sm:$0xff] }
  0x3e   : > { %v4629_v58 = vmul.f32 %v3060_v55, %v4540_v30  ;;  %v4633_v60 = vmul.f32 %v3062_v59, %v4540_v30  ;;  %v3064_v62 = vsel %vm331_vm5, 1.0, %v5675_v35  ;;  %v4646_v63 = vadd.s32 104, %v4439_v1  ;;  %v967_v55 = vld [vmem:[#allocation2 + $0xc8] sm:$0xff] }
  0x3f   : > { %3898 = vmatpush1.bf16.xpose.msk.msra.mxu0 %vm3897_vm14, %v4354_v16  ;;  %vm431_vm14 = vcmp.eq.s32.totalorder %v4577_v44, %v4478_v12  ;;  %v4649_v0 = vmul.f32 %v3064_v62, %v4540_v30  ;;  %v4654_v5 = vadd.s32 112, %v4439_v1  ;;  %v4657_v6 = vadd.s32 120, %v4439_v1 }
  0x40   : > { %3436 = vmatmul.mubr.msk.f32.gmra.mrb[6].mxu1 %vm748_vm0, %v739_v27  ;;  %3900 = vmatprep.subr.msk.bf16.mxu0 %vm3899_vm15, %v4354_v16  ;;  %vm433_vm15 = vcmp.eq.s32.totalorder %v4580_v45, %v4478_v12  ;;  %vm430_vm7 = vcmp.eq.s32.totalorder %v4577_v44, %v4481_v13  ;;  %vm432_vm8 = vcmp.eq.s32.totalorder %v4580_v45, %v4481_v13  ;;  %v955_v27 = vld [vmem:[#allocation2 + $0x68] sm:$0xff] }
  0x41   : > { %3438 = vmatprep.mubr.msk.f32.mxu1 %vm748_vm0, %v740_v29  ;;  %vm3907_vm4 = vmpackc.low %vm433_vm15, %vm431_vm14  ;;  %vm435_vm10 = vcmp.eq.s32.totalorder %v4618_v54, %v4478_v12  ;;  %vm437_vm11 = vcmp.eq.s32.totalorder %v4624_v56, %v4478_v12  ;;  %vm339_vm12 = vcmp.eq.s32.totalorder %v4654_v5, %v4535_v28  ;;  %vm341_vm14 = vcmp.eq.s32.totalorder %v4657_v6, %v4535_v28  ;;  %v958_v29 = vld [vmem:[#allocation2 + $0x80] sm:$0xff] }
  0x42   : > { %vm3909_vm13 = vmpackc.low %vm432_vm8, %vm430_vm7  ;;  %v3072_v26 = vsel %vm339_vm12, 1.0, %v5675_v35  ;;  %v3074_v34 = vsel %vm341_vm14, 1.0, %v5675_v35  ;;  %v3929_v38 = vpack.c.bf16 %v951_v25, %v948_v24  ;;  %vm434_vm1 = vcmp.eq.s32.totalorder %v4618_v54, %v4481_v13  ;;  %v972_v25 = vld [vmem:[#allocation2 + $0xf0] sm:$0xff] }
  0x43   : > { %vm3911_vm15 = vmpackc.low %vm437_vm11, %vm435_vm10  ;;  %v4695_v31 = vmul.f32 %v3072_v26, %v4540_v30  ;;  %v4699_v36 = vmul.f32 %v3074_v34, %v4540_v30  ;;  %vm436_vm2 = vcmp.eq.s32.totalorder %v4624_v56, %v4481_v13  ;;  %v3935_v49 = vpack.c.bf16 %v964_v43, %v961_v42  ;;  %v975_v26 = vld [vmem:[#allocation2 + $0x108] sm:$0xff] }
  0x44   : > { %3439 = vmatmul.mubr.msk.f32.gmra.mrb[8].mxu1 %vm748_vm0, %v741_v37  ;;  %v3927_v37 = vpack.c.bf16 %v952_v23, %v949_v19  ;;  %vm3913_vm5 = vmpackc.low %vm436_vm2, %vm434_vm1  ;;  %v976_v19 = vld [vmem:[#allocation2 + $0x110] sm:$0xff]  ;;  %vm440_vm7 = vcmp.eq.s32.totalorder %v4646_v63, %v4481_v13  ;;  %vm443_vm8 = vcmp.eq.s32.totalorder %v4654_v5, %v4478_v12  ;;  %v3945_v34 = vpack.c.bf16 %v975_v26, %v972_v25  ;;  %v947_v25 = vld [vmem:[#allocation2 + $0x28] sm:$0xff] }
  0x45   : > { %3441 = vmatprep.mubr.msk.f32.mxu1 %vm748_vm0, %v742_v39  ;;  %v954_v39 = vld [vmem:[#allocation2 + $0x60] sm:$0xff]  ;;  %vm442_vm12 = vcmp.eq.s32.totalorder %v4654_v5, %v4481_v13  ;;  %vm313_vm1 = vcmp.eq.s32.totalorder %v4466_v7, %v4535_v28 }
  0x46   : > { %3928 = vmatprep.subr.bf16.mxu1 %v3927_v37 }
  0x47   : > { %3902 = vmatpush1.bf16.xpose.msk.msra.mxu0 %vm3901_vm6, %v4354_v16  ;;  %vm333_vm6 = vcmp.eq.s32.totalorder %v4624_v56, %v4535_v28  ;;  %3930 = vmatpush1.bf16.msra.mxu1 %v3929_v38  ;;  %v978_v38 = vld [vmem:[#allocation2 + $0x120] sm:$0xff] }
  0x48   : > { %3442 = vmatmul.mubr.msk.f32.gmra.mrb[10].mxu1 %vm748_vm0, %v743_v40  ;;  %3904 = vmatprep.subr.msk.bf16.mxu0 %vm3903_vm9, %v4354_v16  ;;  %v3066_v4 = vsel %vm333_vm6, 1.0, %v5675_v35  ;;  %vm337_vm9 = vcmp.eq.s32.totalorder %v4646_v63, %v4535_v28  ;;  %v957_v40 = vld [vmem:[#allocation2 + $0x78] sm:$0xff] }
  0x49   : > { %3444 = vmatprep.mubr.msk.f32.mxu1 %vm748_vm0, %v744_v41  ;;  %v4660_v8 = vmul.f32 %v3066_v4, %v4540_v30  ;;  %v3070_v15 = vsel %vm337_vm9, 1.0, %v5675_v35  ;;  %v3931_v41 = vpack.c.bf16 %v958_v29, %v955_v27  ;;  %v966_v4 = vld [vmem:[#allocation2 + $0xc0] sm:$0xff]  ;;  %vm445_vm9 = vcmp.eq.s32.totalorder %v4657_v6, %v4478_v12  ;;  %v979_v27 = vld [vmem:[#allocation2 + $0x128] sm:$0xff] }
  0x4a   : > { %v4681_v20 = vmul.f32 %v3070_v15, %v4540_v30  ;;  %v973_v15 = vld [vmem:[#allocation2 + $0xf8] sm:$0xff]  ;;  %v982_v29 = vld [vmem:[#allocation2 + $0x140] sm:$0xff]  ;;  %vm3919_vm11 = vmpackc.low %vm445_vm9, %vm443_vm8 }
  0x4b   : > { %3932 = vmatprep.subr.bf16.mxu1 %v3931_v41  ;;  %v3943_v24 = vpack.c.bf16 %v976_v19, %v973_v15  ;;  %v3947_v37 = vpack.c.bf16 %v982_v29, %v979_v27  ;;  %v953_v27 = vld [vmem:[#allocation2 + $0x58] sm:$0xff] }
  0x4c   : > { %3445 = vmatmul.mubr.msk.f32.gmra.mrb[12].mxu1 %vm748_vm0, %v745_v48  ;;  %v3933_v48 = vpack.c.bf16 %v957_v40, %v954_v39  ;;  %v981_v39 = vld [vmem:[#allocation2 + $0x138] sm:$0xff] }
  0x4d   : > { %3447 = vmatprep.mubr.msk.f32.mxu1 %vm748_vm0, %v746_v50  ;;  %v960_v50 = vld [vmem:[#allocation2 + $0x90] sm:$0xff]  ;;  %v3949_v40 = vpack.c.bf16 %v981_v39, %v978_v38  ;;  %v959_v39 = vld [vmem:[#allocation2 + $0x88] sm:$0xff] }
  0x4e   : > { %3934 = vmatpush1.bf16.msra.mxu1 %v3933_v48  ;;  %v3937_v59 = vpack.c.bf16 %v963_v52, %v960_v50  ;;  %v956_v38 = vld [vmem:[#allocation2 + $0x70] sm:$0xff] }
  0x4f   : > { %3906 = vmatpush1.bf16.xpose.msk.msra.mxu0 %vm3905_vm3, %v4354_v16  ;;  %vm439_vm3 = vcmp.eq.s32.totalorder %v4638_v61, %v4478_v12  ;;  %3936 = vmatprep.subr.bf16.mxu1 %v3935_v49 }
  0x50   : > { %3448 = vmatmul.mubr.msk.f32.gmra.mrb[14].mxu1 %vm748_vm0, %v747_v57  ;;  %3908 = vmatprep.subr.msk.bf16.mxu0 %vm3907_vm4, %v4354_v16  ;;  %vm335_vm0 = vcmp.eq.s32.totalorder %v4638_v61, %v4535_v28  ;;  %vm441_vm4 = vcmp.eq.s32.totalorder %v4646_v63, %v4478_v12  ;;  %v970_v57 = vld [vmem:[#allocation2 + $0xe0] sm:$0xff]  ;;  %v4725_v12 = vrot.slane %v4522_v21, %v4453_v3 }
  0x51   : > { %v3068_v9 = vsel %vm335_vm0, 1.0, %v5675_v35  ;;  %1072 = vmatprep.mubr.f32.mxu1 %v5675_v35  ;;  %vm3915_vm6 = vmpackc.low %vm441_vm4, %vm439_vm3  ;;  %v3939_v62 = vpack.c.bf16 %v970_v57, %v967_v55  ;;  %vm438_vm0 = vcmp.eq.s32.totalorder %v4638_v61, %v4481_v13  ;;  %v4737_v21 = vrot.slane %v4528_v22, %v4453_v3 }
  0x52   : > { %v4677_v14 = vmul.f32 %v3068_v9, %v4540_v30  ;;  %v969_v9 = vld [vmem:[#allocation2 + $0xd8] sm:$0xff]  ;;  %3938 = vmatpush1.bf16.msra.mxu1 %v3937_v59  ;;  %vm3917_vm10 = vmpackc.low %vm440_vm7, %vm438_vm0  ;;  %vm312_vm2 = vcmp.eq.s32.totalorder %v4466_v7, %v4725_v12  ;;  %vm315_vm3 = vcmp.eq.s32.totalorder %v4472_v10, %v4535_v28  ;;  %vm314_vm4 = vcmp.eq.s32.totalorder %v4472_v10, %v4725_v12 }
  0x53   : > { %v3941_v23 = vpack.c.bf16 %v969_v9, %v966_v4  ;;  %3940 = vmatprep.subr.bf16.mxu1 %v3939_v62  ;;  %v3045_v48 = vsel %vm312_vm2, 1.0, %v5675_v35  ;;  %v3048_v22 = vsel %vm315_vm3, 1.0, %v5675_v35  ;;  %v3047_v49 = vsel %vm314_vm4, 1.0, %v5675_v35  ;;  %v985_v59 = vld [vmem:[#allocation2 + $0x158] sm:$0xff]  ;;  %v988_v62 = vld [vmem:[#allocation2 + $0x170] sm:$0xff]  ;;  %v987_v9 = vld [vmem:[#allocation2 + $0x168] sm:$0xff] }
  0x54   : > { %v523_v7 = vmul.f32 %v3045_v48, %v4737_v21  ;;  %v525_v52 = vmul.f32 %v3047_v49, %v4737_v21  ;;  %vm318_vm0 = vcmp.eq.s32.totalorder %v4501_v17, %v4725_v12  ;;  %vm320_vm7 = vcmp.eq.s32.totalorder %v4504_v18, %v4725_v12  ;;  %v984_v4 = vld [vmem:[#allocation2 + $0x150] sm:$0xff] }
  0x55   : > { %v3051_v57 = vsel %vm318_vm0, 1.0, %v5675_v35  ;;  %vm322_vm8 = vcmp.eq.s32.totalorder %v4543_v32, %v4725_v12  ;;  %v3951_v17 = vpack.c.bf16 %v988_v62, %v985_v59  ;;  %v3953_v15 = vpack.c.bf16 %v987_v9, %v984_v4  ;;  %v980_v62 = vld [vmem:[#allocation2 + $0x130] sm:$0xff] }
  0x56   : > { %3942 = vmatpush1.bf16.msra.mxu1 %v3941_v23  ;;  %v3055_v18 = vsel %vm322_vm8, 1.0, %v5675_v35  ;;  %vm324_vm9 = vcmp.eq.s32.totalorder %v4546_v33, %v4725_v12  ;;  %vm340_vm2 = vcmp.eq.s32.totalorder %v4657_v6, %v4725_v12  ;;  %vm4357_vm3 = vmmov 0  }
  0x57   : > { %3910 = vmatpush1.bf16.xpose.msk.msra.mxu0 %vm3909_vm13, %v4354_v16  ;;  %3944 = vmatprep.subr.bf16.mxu1 %v3943_v24  ;;  %vm444_vm13 = vcmp.eq.s32.totalorder %v4657_v6, %v4481_v13  ;;  %v3046_v13 = vsel %vm313_vm1, 1.0, %v5675_v35  ;;  %v3057_v32 = vsel %vm324_vm9, 1.0, %v5675_v35  ;;  %vm338_vm1 = vcmp.eq.s32.totalorder %v4654_v5, %v4725_v12  ;;  %v944_v24 = vld [vmem:[#allocation2 + $0x10] sm:$0xff]  ;;  %v950_v6 = vld [vmem:[#allocation2 + $0x40] sm:$0xff] }
  0x58   : > { %3912 = vmatprep.subr.msk.bf16.mxu0 %vm3911_vm15, %v4354_v16  ;;  %vm3921_vm14 = vmpackc.low %vm444_vm13, %vm442_vm12  ;;  %vm310_vm15 = vcmp.eq.s32.totalorder %v4439_v1, %v4725_v12  ;;  %v524_v43 = vmul.f32 %v3046_v13, %v4540_v30  ;;  %v535_v23 = vmul.f32 %v3057_v32, %v4737_v21  ;;  %vm330_vm12 = vcmp.eq.s32.totalorder %v4618_v54, %v4725_v12  ;;  %v965_v13 = vld [vmem:[#allocation2 + $0xb8] sm:$0xff] }
  0x59   : > { %v3043_v41 = vsel %vm310_vm15, 1.0, %v5675_v35  ;;  %vm332_vm13 = vcmp.eq.s32.totalorder %v4624_v56, %v4725_v12  ;;  %vm336_vm15 = vcmp.eq.s32.totalorder %v4646_v63, %v4725_v12  ;;  %v3955_v63 = vpack.c.bf16 %v947_v25, %v944_v24 }
  0x5a   : > { %3946 = vmatpush1.bf16.msra.mxu1 %v3945_v34  ;;  %v521_v42 = vmul.f32 %v3043_v41, %v4737_v21  ;;  %v3073_v5 = vsel %vm340_vm2, 1.0, %v5675_v35  ;;  %v962_v41 = vld [vmem:[#allocation2 + $0xa0] sm:$0xff] }
  0x5b   : > { %3948 = vmatprep.subr.bf16.mxu1 %v3947_v37  ;;  %v551_v26 = vmul.f32 %v3073_v5, %v4737_v21 }
  0x5e   : > { %3950 = vmatpush1.bf16.msra.mxu1 %v3949_v40 }
  0x5f   : > { %3914 = vmatpush1.bf16.xpose.msk.msra.mxu0 %vm3913_vm5, %v4354_v16  ;;  %vm317_vm5 = vcmp.eq.s32.totalorder %v4475_v11, %v4535_v28  ;;  %3952 = vmatprep.subr.bf16.mxu1 %v3951_v17  ;;  %v983_v17 = vld [vmem:[#allocation2 + $0x148] sm:$0xff] }
  0x60   : > { %3916 = vmatprep.subr.msk.bf16.mxu0 %vm3915_vm6, %v4354_v16  ;;  %v3050_v50 = vsel %vm317_vm5, 1.0, %v5675_v35  ;;  %vm316_vm6 = vcmp.eq.s32.totalorder %v4475_v11, %v4725_v12  ;;  %v529_v11 = vmul.f32 %v3051_v57, %v4737_v21 }
  0x61   : > { %v528_v10 = vmul.f32 %v3050_v50, %v4540_v30  ;;  %v3049_v28 = vsel %vm316_vm6, 1.0, %v5675_v35 }
  0x62   : > { %v527_v55 = vmul.f32 %v3049_v28, %v4737_v21  ;;  %3954 = vmatpush1.bf16.msra.mxu1 %v3953_v15  ;;  %v974_v28 = vld [vmem:[#allocation2 + $0x100] sm:$0xff] }
  0x63   : > { %3956 = vmatprep.subr.bf16.mxu1 %v3955_v63 }
  0x67   : > { %3918 = vmatpush1.bf16.xpose.msk.msra.mxu0 %vm3917_vm10, %v4354_v16  ;;  %vm326_vm10 = vcmp.eq.s32.totalorder %v4577_v44, %v4725_v12 }
  0x68   : > { %3920 = vmatprep.subr.msk.bf16.mxu0 %vm3919_vm11, %v4354_v16  ;;  %vm328_vm11 = vcmp.eq.s32.totalorder %v4580_v45, %v4725_v12 }
  0x6f   : > { %3922 = vmatpush1.bf16.xpose.msk.msra.mxu0 %vm3921_vm14, %v4354_v16  ;;  %v526_v16 = vmul.f32 %v3048_v22, %v4540_v30  ;;  %v3053_v30 = vsel %vm320_vm7, 1.0, %v5675_v35  ;;  %vm334_vm14 = vcmp.eq.s32.totalorder %v4638_v61, %v4725_v12  ;;  %v3967_v22 = vpack.c.bf16 %v965_v13, %v962_v41 }
  0x70   : > { %v531_v19 = vmul.f32 %v3053_v30, %v4737_v21 }
  0x76   : > { %618 = vmatmul.mubr.f32.vlgmr.msra.gmra.mrb[0].mxu0 %v521_v42 }
  0x77   : > { %622 = vmatprep.mubr.f32.mxu0 %v524_v43 }
  0x7a   : > { %623 = vmatmul.mubr.f32.gmra.mrb[2].mxu0 %v523_v7  ;;  %v968_v7 = vld [vmem:[#allocation2 + $0xd0] sm:$0xff] }
  0x7b   : > { %627 = vmatprep.mubr.f32.mxu0 %v526_v16  ;;  %v971_v16 = vld [vmem:[#allocation2 + $0xe8] sm:$0xff] }
  0x7e   : > { %628 = vmatmul.mubr.f32.gmra.mrb[4].mxu0 %v525_v52 }
  0x7f   : > { %632 = vmatprep.mubr.f32.mxu0 %v528_v10  ;;  %v3971_v10 = vpack.c.bf16 %v971_v16, %v968_v7 }
  0x82   : > { %633 = vmatmul.mubr.f32.gmra.mrb[6].mxu0 %v527_v55  ;;  %v977_v55 = vld [vmem:[#allocation2 + $0x118] sm:$0xff] }
  0x83   : > { %637 = vmatprep.mubr.f32.mxu0 %v4583_v46  ;;  %v533_v46 = vmul.f32 %v3055_v18, %v4737_v21  ;;  %v3975_v59 = vpack.c.bf16 %v977_v55, %v974_v28  ;;  %v986_v18 = vld [vmem:[#allocation2 + $0x160] sm:$0xff]  ;;  %v1524_v55 = vld [vmem:[#allocation2 + $0x188] sm:$0xff] }
  0x86   : > { %638 = vmatmul.mubr.f32.gmra.mrb[8].mxu0 %v529_v11 }
  0x87   : > { %642 = vmatprep.mubr.f32.mxu0 %v4586_v47  ;;  %v3059_v47 = vsel %vm326_vm10, 1.0, %v5675_v35 }
  0x88   : > { %v537_v33 = vmul.f32 %v3059_v47, %v4737_v21 }
  0x8a   : > { %643 = vmatmul.mubr.f32.gmra.mrb[10].mxu0 %v531_v19  ;;  %v3979_v19 = vpack.c.bf16 %v983_v17, %v980_v62  ;;  %v1530_v17 = vld [vmem:[#allocation2 + $0x1b8] sm:$0xff] }
  0x8b   : > { %647 = vmatprep.mubr.f32.mxu0 %v4604_v51  ;;  %v3061_v51 = vsel %vm328_vm11, 1.0, %v5675_v35 }
  0x8c   : > { %v539_v44 = vmul.f32 %v3061_v51, %v4737_v21 }
  0x8e   : > { %648 = vmatmul.mubr.f32.gmra.mrb[12].mxu0 %v533_v46  ;;  %v989_v46 = vld [vmem:[#allocation2 + $0x178] sm:$0xff] }
  0x8f   : > { %652 = vmatprep.mubr.f32.mxu0 %v4612_v53  ;;  %v3063_v53 = vsel %vm330_vm12, 1.0, %v5675_v35 }
  0x90   : > { %v541_v45 = vmul.f32 %v3063_v53, %v4737_v21 }
  0x92   : > { %653 = vmatmul.mubr.f32.gmra.mrb[14].mxu0 %v535_v23 }
  0x93   : > { %657 = vmatprep.mubr.f32.mxu0 %v4629_v58  ;;  %v3065_v58 = vsel %vm332_vm13, 1.0, %v5675_v35 }
  0x94   : > { %v543_v54 = vmul.f32 %v3065_v58, %v4737_v21 }
  0x96   : > { %658 = vmatmul.mubr.f32.gmra.mrb[16].mxu0 %v537_v33  ;;  %v3983_v33 = vpack.c.bf16 %v989_v46, %v986_v18  ;;  %v1536_v46 = vld [vmem:[#allocation2 + $0x1e8] sm:$0xff] }
  0x97   : > { %662 = vmatprep.mubr.f32.mxu0 %v4633_v60  ;;  %v3067_v60 = vsel %vm334_vm14, 1.0, %v5675_v35 }
  0x98   : > { %v545_v56 = vmul.f32 %v3067_v60, %v4737_v21 }
  0x9a   : > { %663 = vmatmul.mubr.f32.gmra.mrb[18].mxu0 %v539_v44 }
  0x9b   : > { %667 = vmatprep.mubr.f32.mxu0 %v4649_v0  ;;  %v3069_v0 = vsel %vm336_vm15, 1.0, %v5675_v35 }
  0x9c   : > { %v547_v61 = vmul.f32 %v3069_v0, %v4737_v21 }
  0x9e   : > { %668 = vmatmul.mubr.f32.gmra.mrb[20].mxu0 %v541_v45 }
  0x9f   : > { %672 = vmatprep.mubr.f32.mxu0 %v4660_v8  ;;  %v3071_v8 = vsel %vm338_vm1, 1.0, %v5675_v35 }
  0xa2   : > { %673 = vmatmul.mubr.f32.gmra.mrb[22].mxu0 %v543_v54 }
  0xa3   : > { %677 = vmatprep.mubr.f32.mxu0 %v4677_v14  ;;  %v549_v14 = vmul.f32 %v3071_v8, %v4737_v21  ;;  %v3963_v21 = vpack.c.bf16 %v959_v39, %v956_v38 }
  0xa6   : > { %678 = vmatmul.mubr.f32.gmra.mrb[24].mxu0 %v545_v56 }
  0xa7   : > { %682 = vmatprep.mubr.f32.mxu0 %v4681_v20  ;;  %v4827_v20 = vld [vmem:[%s5670_s3 + $0x18] ss:$0 sm:$0xff] }
  0xaa   : > { %683 = vmatmul.mubr.f32.gmra.mrb[26].mxu0 %v547_v61 }
  0xab   : > { %687 = vmatprep.mubr.f32.mxu0 %v4695_v31  ;;  %v3959_v31 = vpack.c.bf16 %v953_v27, %v950_v6 }
  0xae   : > { %688 = vmatmul.mubr.f32.gmra.mrb[28].mxu0 %v549_v14 }
  0xaf   : > { %692 = vmatprep.mubr.f32.mxu0 %v4699_v36 }
  0xb2   : > { %693 = vmatmul.mubr.f32.gmra.mrb[30].mxu0 %v551_v26 }
 0x107   : > { %v3428_v29 = vpop.f32.mrb[0].mxu1 }
 0x108   : > { %v863_v34 = vpop.f32.mrb[1].mxu1  ;;  %v4835_v40 = vadd.f32 %v3428_v29, %v4827_v20 }
 0x109   : > { %v4830_v37 = vadd.f32 %v863_v34, %v4827_v20 }
 0x10b   : > { %1073 = vmatmul.mubr.f32.vlgmr.msra.gmra.mrb[16].mxu1 %v4830_v37  ;;  %v3431_v12 = vpop.f32.mrb[2].mxu1 }
 0x10c   : > { %1078 = vmatprep.mubr.f32.mxu1 %v5675_v35  ;;  %v873_v36 = vpop.f32.mrb[3].mxu1  ;;  %3958 = vmatpush3.bf16.msra.mxu1 %v3955_v63  ;;  %v4845_v52 = vadd.f32 %v3431_v12, %v4827_v20 }
 0x10d   : > { %3960 = vmatprep.subr.bf16.mxu1 %v3959_v31  ;;  %v4838_v42 = vadd.f32 %v873_v36, %v4827_v20 }
 0x10f   : > { %1079 = vmatmul.mubr.f32.gmra.mrb[18].mxu1 %v4835_v40  ;;  %v3434_v43 = vpop.f32.mrb[4].mxu1 }
 0x110   : > { %1084 = vmatprep.mubr.f32.mxu1 %v5675_v35  ;;  %v883_v48 = vpop.f32.mrb[5].mxu1  ;;  %3962 = vmatpush3.bf16.msra.mxu1 %v3959_v31  ;;  %v889_v15 = vadd.f32 %v3434_v43, %v4827_v20 }
 0x111   : > { %3964 = vmatprep.subr.bf16.mxu1 %v3963_v21  ;;  %v4848_v57 = vadd.f32 %v883_v48, %v4827_v20 }
 0x113   : > { %1085 = vmatmul.mubr.f32.gmra.mrb[20].mxu1 %v4838_v42  ;;  %v3437_v49 = vpop.f32.mrb[6].mxu1 }
 0x114   : > { %1090 = vmatprep.mubr.f32.mxu1 %v5675_v35  ;;  %v893_v50 = vpop.f32.mrb[7].mxu1  ;;  %3966 = vmatpush3.bf16.msra.mxu1 %v3963_v21  ;;  %v899_v53 = vadd.f32 %v3437_v49, %v4827_v20 }
 0x115   : > { %3968 = vmatprep.subr.bf16.mxu1 %v3967_v22  ;;  %v894_v32 = vadd.f32 %v893_v50, %v4827_v20 }
 0x117   : > { %1091 = vmatmul.mubr.f32.gmra.mrb[22].mxu1 %v4845_v52  ;;  %v3440_v11 = vpop.f32.mrb[8].mxu1 }
 0x118   : > { %1096 = vmatprep.mubr.f32.mxu1 %v5675_v35  ;;  %v903_v30 = vpop.f32.mrb[9].mxu1  ;;  %3970 = vmatpush3.bf16.msra.mxu1 %v3967_v22  ;;  %v909_v58 = vadd.f32 %v3440_v11, %v4827_v20  ;;  %v1523_v11 = vld [vmem:[#allocation2 + $0x180] sm:$0xff] }
 0x119   : > { %3972 = vmatprep.subr.bf16.mxu1 %v3971_v10  ;;  %v904_v45 = vadd.f32 %v903_v30, %v4827_v20 }
 0x11b   : > { %1097 = vmatmul.mubr.f32.gmra.mrb[24].mxu1 %v4848_v57  ;;  %v3443_v4 = vpop.f32.mrb[10].mxu1 }
 0x11c   : > { %1102 = vmatprep.mubr.f32.mxu1 %v5675_v35  ;;  %v913_v9 = vpop.f32.mrb[11].mxu1  ;;  %3974 = vmatpush3.bf16.msra.mxu1 %v3971_v10  ;;  %v919_v60 = vadd.f32 %v3443_v4, %v4827_v20  ;;  %v1533_v4 = vld [vmem:[#allocation2 + $0x1d0] sm:$0xff] }
 0x11d   : > { %3976 = vmatprep.subr.bf16.mxu1 %v3975_v59  ;;  %v914_v54 = vadd.f32 %v913_v9, %v4827_v20  ;;  %v1529_v9 = vld [vmem:[#allocation2 + $0x1b0] sm:$0xff] }
 0x11f   : > { %1103 = vmatmul.mubr.f32.gmra.mrb[26].mxu1 %v889_v15  ;;  %v3446_v23 = vpop.f32.mrb[12].mxu1 }
 0x120   : > { %1108 = vmatprep.mubr.f32.mxu1 %v5675_v35  ;;  %v923_v47 = vpop.f32.mrb[13].mxu1  ;;  %3978 = vmatpush3.bf16.msra.mxu1 %v3975_v59  ;;  %v929_v0 = vadd.f32 %v3446_v23, %v4827_v20  ;;  %v1526_v59 = vld [vmem:[#allocation2 + $0x198] sm:$0xff] }
 0x121   : > { %3980 = vmatprep.subr.bf16.mxu1 %v3979_v19  ;;  %v924_v56 = vadd.f32 %v923_v47, %v4827_v20  ;;  %v4021_v62 = vpack.c.bf16 %v1526_v59, %v1523_v11  ;;  %v1535_v47 = vld [vmem:[#allocation2 + $0x1e0] sm:$0xff] }
 0x123   : > { %1109 = vmatmul.mubr.f32.gmra.mrb[28].mxu1 %v894_v32  ;;  %v3449_v51 = vpop.f32.mrb[14].mxu1 }
 0x124   : > { %1114 = vmatprep.mubr.f32.mxu1 %v5675_v35  ;;  %v933_v44 = vpop.f32.mrb[15].mxu1  ;;  %3982 = vmatpush3.bf16.msra.mxu1 %v3979_v19  ;;  %v939_v8 = vadd.f32 %v3449_v51, %v4827_v20  ;;  %v1532_v19 = vld [vmem:[#allocation2 + $0x1c8] sm:$0xff]  ;;  %v1542_v51 = vld [vmem:[#allocation2 + $0x218] sm:$0xff] }
 0x125   : > { %3984 = vmatprep.subr.bf16.mxu1 %v3983_v33  ;;  %v934_v61 = vadd.f32 %v933_v44, %v4827_v20  ;;  %v4025_v18 = vpack.c.bf16 %v1532_v19, %v1529_v9  ;;  %v1545_v44 = vld [vmem:[#allocation2 + $0x230] sm:$0xff] }
 0x127   : > { %1115 = vmatmul.mubr.f32.gmra.mrb[30].mxu1 %v899_v53 }
 0x128   : > { %1120 = vmatprep.mubr.f32.mxu1 %v5675_v35  ;;  %3986 = vmatpush3.bf16.msra.mxu1 %v3983_v33  ;;  %v1538_v33 = vld [vmem:[#allocation2 + $0x1f8] sm:$0xff] }
 0x12b   : > { %1121 = vmatmul.mubr.f32.gmra.mrb[32].mxu1 %v904_v45 }
 0x12c   : > { %1126 = vmatprep.mubr.f32.mxu1 %v5675_v35 }
 0x12f   : > { %1127 = vmatmul.mubr.f32.gmra.mrb[34].mxu1 %v909_v58 }
 0x130   : > { %1132 = vmatprep.mubr.f32.mxu1 %v5675_v35 }
 0x133   : > { %1133 = vmatmul.mubr.f32.gmra.mrb[36].mxu1 %v914_v54 }
 0x134   : > { %1138 = vmatprep.mubr.f32.mxu1 %v5675_v35 }
 0x137   : > { %1139 = vmatmul.mubr.f32.gmra.mrb[38].mxu1 %v919_v60 }
 0x138   : > { %1144 = vmatprep.mubr.f32.mxu1 %v5675_v35 }
 0x13b   : > { %1145 = vmatmul.mubr.f32.gmra.mrb[40].mxu1 %v924_v56 }
 0x13c   : > { %1150 = vmatprep.mubr.f32.mxu1 %v5675_v35 }
 0x13f   : > { %1151 = vmatmul.mubr.f32.gmra.mrb[42].mxu1 %v929_v0 }
 0x140   : > { %1156 = vmatprep.mubr.f32.mxu1 %v5675_v35 }
 0x143   : > { %1157 = vmatmul.mubr.f32.gmra.mrb[44].mxu1 %v934_v61 }
 0x144   : > { %1162 = vmatprep.mubr.f32.mxu1 %v5675_v35 }
 0x147   : > { %1163 = vmatmul.mubr.f32.gmra.mrb[46].mxu1 %v939_v8 }
 0x148   : > { %3482 = vmatprep.mubr.f32.mxu1 %v4830_v37 }
 0x149   : > { %v4876_v24 = vpop.f32.mrb[0].mxu0 }
 0x14a   : > { %5712 = vst [vmem:[#allocation7_spill] sm:$0xff] %v4876_v24  ;;  %698 = vadd.xlane.f32.xlu0 %v4876_v24  ;;  %v621_v25 = vpop.f32.mrb[1].mxu0  ;;  %3538 = vmatprep.mubr.f32.mxu0 %v4876_v24 }
 0x14b   : > { %3483 = vmatmul.mubr.f32.vlgmr.msra.gmra.mrb[48].mxu1 %v4835_v40  ;;  %v1550_v25 = vld [vmem:[#allocation2 + $0x258] sm:$0xff] }
 0x14c   : > { %3485 = vmatprep.mubr.f32.mxu1 %v4838_v42 }
 0x14d   : > { %v4882_v63 = vpop.f32.mrb[2].mxu0 }
 0x14e   : > { %700 = vadd.xlane.f32.xlu0 %v4882_v63  ;;  %v626_v14 = vpop.f32.mrb[3].mxu0 }
 0x14f   : > { %3486 = vmatmul.mubr.f32.gmra.mrb[50].mxu1 %v4845_v52  ;;  %v1554_v14 = vld [vmem:[#allocation2 + $0x278] sm:$0xff] }
 0x150   : > { %3488 = vmatprep.mubr.f32.mxu1 %v4848_v57  ;;  %v1527_v57 = vld [vmem:[#allocation2 + $0x1a0] sm:$0xff] }
 0x151   : > { %v4887_v5 = vpop.f32.mrb[4].mxu0  ;;  %v4019_v30 = vpack.c.bf16 %v1527_v57, %v1524_v55 }
 0x152   : > { %702 = vadd.xlane.f32.xlu1 %v4887_v5  ;;  %v631_v26 = vpop.f32.mrb[5].mxu0 }
 0x153   : > { %3489 = vmatmul.mubr.f32.gmra.mrb[52].mxu1 %v889_v15  ;;  %4020 = vmatprep.subr.bf16.mxu1 %v4019_v30  ;;  %v4023_v15 = vpack.c.bf16 %v1533_v4, %v1530_v17  ;;  %v1557_v26 = vld [vmem:[#allocation2 + $0x290] sm:$0xff] }
 0x154   : > { %3491 = vmatprep.mubr.f32.mxu1 %v894_v32  ;;  %4022 = vmatpush1.bf16.msra.mxu1 %v4021_v62  ;;  %v1539_v32 = vld [vmem:[#allocation2 + $0x200] sm:$0xff] }
 0x155   : > { %v4890_v20 = vpop.f32.mrb[6].mxu0  ;;  %4024 = vmatprep.subr.bf16.mxu1 %v4023_v15  ;;  %v4027_v23 = vpack.c.bf16 %v1539_v32, %v1536_v46 }
 0x156   : > { %704 = vadd.xlane.f32.xlu1 %v4890_v20  ;;  %v636_v6 = vpop.f32.mrb[7].mxu0 }
 0x157   : > { %3492 = vmatmul.mubr.f32.gmra.mrb[54].mxu1 %v899_v53  ;;  %v4029_v53 = vpack.c.bf16 %v1538_v33, %v1535_v47 }
 0x158   : > { %3494 = vmatprep.mubr.f32.mxu1 %v904_v45  ;;  %4026 = vmatpush1.bf16.msra.mxu1 %v4025_v18  ;;  %v4031_v45 = vpack.c.bf16 %v1545_v44, %v1542_v51 }
 0x159   : > { %v4893_v27 = vpop.f32.mrb[8].mxu0  ;;  %4028 = vmatprep.subr.bf16.mxu1 %v4027_v23 }
 0x15a   : > { %706 = vadd.xlane.f32.xlu0 %v4893_v27  ;;  %v641_v29 = vpop.f32.mrb[9].mxu0 }
 0x15b   : > { %3495 = vmatmul.mubr.f32.gmra.mrb[56].mxu1 %v909_v58  ;;  %v1541_v58 = vld [vmem:[#allocation2 + $0x210] sm:$0xff]  ;;  %v4039_v29 = vpack.c.bf16 %v1557_v26, %v1554_v14 }
 0x15c   : > { %3497 = vmatprep.mubr.f32.mxu1 %v914_v54  ;;  %v1544_v54 = vld [vmem:[#allocation2 + $0x228] sm:$0xff]  ;;  %4030 = vmatpush1.bf16.msra.mxu1 %v4029_v53 }
 0x15d   : > { %v4896_v34 = vpop.f32.mrb[10].mxu0  ;;  %4032 = vmatprep.subr.bf16.mxu1 %v4031_v45 }
 0x15e   : > { %708 = vadd.xlane.f32.xlu1 %v4896_v34  ;;  %v646_v37 = vpop.f32.mrb[11].mxu0 }
 0x15f   : > { %3498 = vmatmul.mubr.f32.gmra.mrb[58].mxu1 %v919_v60  ;;  %v1548_v60 = vld [vmem:[#allocation2 + $0x248] sm:$0xff]  ;;  %v1553_v37 = vld [vmem:[#allocation2 + $0x270] sm:$0xff] }
 0x160   : > { %3500 = vmatprep.mubr.f32.mxu1 %v924_v56  ;;  %v1551_v56 = vld [vmem:[#allocation2 + $0x260] sm:$0xff] }
 0x161   : > { %v4899_v31 = vpop.f32.mrb[12].mxu0 }
 0x162   : > { %710 = vadd.xlane.f32.xlu0 %v4899_v31  ;;  %v651_v38 = vpop.f32.mrb[13].mxu0 }
 0x163   : > { %3501 = vmatmul.mubr.f32.gmra.mrb[60].mxu1 %v929_v0  ;;  %v4033_v0 = vpack.c.bf16 %v1544_v54, %v1541_v58  ;;  %v1556_v38 = vld [vmem:[#allocation2 + $0x288] sm:$0xff] }
 0x164   : > { %3503 = vmatprep.mubr.f32.mxu1 %v934_v61  ;;  %v4035_v61 = vpack.c.bf16 %v1551_v56, %v1548_v60 }
 0x165   : > { %v4902_v39 = vpop.f32.mrb[14].mxu0  ;;  %4034 = vmatpush1.bf16.msra.mxu1 %v4033_v0 }
 0x166   : > { %712 = vadd.xlane.f32.xlu1 %v4902_v39  ;;  %v656_v12 = vpop.f32.mrb[15].mxu0  ;;  %4036 = vmatprep.subr.bf16.mxu1 %v4035_v61 }
 0x167   : > { %3504 = vmatmul.mubr.f32.gmra.mrb[62].mxu1 %v939_v8  ;;  %v1547_v8 = vld [vmem:[#allocation2 + $0x240] sm:$0xff]  ;;  %v4041_v12 = vpack.c.bf16 %v1556_v38, %v1553_v37 }
 0x168   : > { %1653 = vmatprep.mubr.f32.mxu1 %v5675_v35  ;;  %v4037_v6 = vpack.c.bf16 %v1550_v25, %v1547_v8 }
 0x169   : > { %v4906_v36 = vpop.f32.mrb[16].mxu0 }
 0x16a   : > { %714 = vadd.xlane.f32.xlu0 %v4906_v36  ;;  %v661_v40 = vpop.f32.mrb[17].mxu0  ;;  %4038 = vmatpush1.bf16.msra.mxu1 %v4037_v6 }
 0x16b   : > { %4040 = vmatprep.subr.bf16.mxu1 %v4039_v29  ;;  %v4933_v40 = vld [vmem:[%s5670_s3 + $0x19] ss:$8 sm:$0x7] }
 0x16d   : > { %v4909_v21 = vpop.f32.mrb[18].mxu0 }
 0x16e   : > { %5713 = vst [vmem:[#allocation8_spill] sm:$0xff] %v4909_v21  ;;  %716 = vadd.xlane.f32.xlu1 %v4909_v21  ;;  %v666_v41 = vpop.f32.mrb[19].mxu0  ;;  %4042 = vmatpush1.bf16.msra.mxu1 %v4041_v12 }
 0x171   : > { %v4912_v13 = vpop.f32.mrb[20].mxu0 }
 0x172   : > { %5714 = vst [vmem:[#allocation9_spill] sm:$0xff] %v4912_v13  ;;  %718 = vadd.xlane.f32.xlu0 %v4912_v13  ;;  %v671_v42 = vpop.f32.mrb[21].mxu0 }
 0x173   : > { %v4937_v42 = vrot.slane %v4933_v40, %v4453_v3 }
 0x175   : > { %v4915_v43 = vpop.f32.mrb[22].mxu0 }
 0x176   : > { %5715 = vst [vmem:[#allocation10_spill] sm:$0xff] %v4915_v43  ;;  %720 = vadd.xlane.f32.xlu1 %v4915_v43  ;;  %v676_v48 = vpop.f32.mrb[23].mxu0 }
 0x179   : > { %v4918_v22 = vpop.f32.mrb[24].mxu0 }
 0x17a   : > { %5716 = vst [vmem:[#allocation11_spill] sm:$0xff] %v4918_v22  ;;  %722 = vadd.xlane.f32.xlu0 %v4918_v22  ;;  %v681_v7 = vpop.f32.mrb[25].mxu0 }
 0x17d   : > { %v4921_v16 = vpop.f32.mrb[26].mxu0 }
 0x17e   : > { %5717 = vst [vmem:[#allocation12_spill] sm:$0xff] %v4921_v16  ;;  %724 = vadd.xlane.f32.xlu1 %v4921_v16  ;;  %v686_v49 = vpop.f32.mrb[27].mxu0 }
 0x181   : > { %v4924_v50 = vpop.f32.mrb[28].mxu0 }
 0x182   : > { %5718 = vst [vmem:[#allocation13_spill] sm:$0xff] %v4924_v50  ;;  %726 = vadd.xlane.f32.xlu0 %v4924_v50  ;;  %v691_v52 = vpop.f32.mrb[29].mxu0 }
 0x185   : > { %v4927_v10 = vpop.f32.mrb[30].mxu0 }
 0x186   : > { %5719 = vst [vmem:[#allocation14_spill] sm:$0xff] %v4927_v10  ;;  %728 = vadd.xlane.f32.xlu1 %v4927_v10  ;;  %v696_v28 = vpop.f32.mrb[31].mxu0 }
 0x1de   : > { %v1074_v41 = vpop.f32.mrb[16].mxu1 }
 0x1df   : > { %v4939_v48 = vpop.f32.mrb[17].mxu1  ;;  %v1075_v49 = vadd.f32 %v1074_v41, %v4937_v42 }
 0x1e2   : > { %v1080_v7 = vpop.f32.mrb[18].mxu1 }
 0x1e3   : > { %v1081_v52 = vadd.f32 %v1080_v7, %v4937_v42  ;;  %v4943_v28 = vpop.f32.mrb[19].mxu1 }
 0x1e5   : > { %v3987_v55 = vpack.c.bf16 %v1081_v52, %v1075_v49 }
 0x1e6   : > { %v1086_v57 = vpop.f32.mrb[20].mxu1 }
 0x1e7   : > { %v4945_v11 = vpop.f32.mrb[21].mxu1  ;;  %3988 = vmatprep.subr.bf16.mxu0 %v3987_v55  ;;  %v1087_v59 = vadd.f32 %v1086_v57, %v4937_v42 }
 0x1e8   : > { %3990 = vmatpush3.bf16.msra.mxu0 %v3987_v55 }
 0x1ea   : > { %v1092_v30 = vpop.f32.mrb[22].mxu1 }
 0x1eb   : > { %v1093_v62 = vadd.f32 %v1092_v30, %v4937_v42  ;;  %v4949_v17 = vpop.f32.mrb[23].mxu1 }
 0x1ed   : > { %v3991_v4 = vpack.c.bf16 %v1093_v62, %v1087_v59 }
 0x1ee   : > { %v1098_v9 = vpop.f32.mrb[24].mxu1 }
 0x1ef   : > { %v4951_v15 = vpop.f32.mrb[25].mxu1  ;;  %3992 = vmatprep.subr.bf16.mxu0 %v3991_v4  ;;  %v1099_v18 = vadd.f32 %v1098_v9, %v4937_v42  ;;  %v1525_v9 = vld [vmem:[#allocation2 + $0x190] sm:$0xff] }
 0x1f0   : > { %3994 = vmatpush3.bf16.msra.mxu0 %v3991_v4 }
 0x1f2   : > { %v1104_v19 = vpop.f32.mrb[26].mxu1 }
 0x1f3   : > { %v1105_v46 = vadd.f32 %v1104_v19, %v4937_v42  ;;  %v4955_v32 = vpop.f32.mrb[27].mxu1  ;;  %v1528_v19 = vld [vmem:[#allocation2 + $0x1a8] sm:$0xff] }
 0x1f5   : > { %v3995_v23 = vpack.c.bf16 %v1105_v46, %v1099_v18 }
 0x1f6   : > { %v1110_v47 = vpop.f32.mrb[28].mxu1 }
 0x1f7   : > { %v4957_v33 = vpop.f32.mrb[29].mxu1  ;;  %3996 = vmatprep.subr.bf16.mxu0 %v3995_v23  ;;  %v1111_v44 = vadd.f32 %v1110_v47, %v4937_v42 }
 0x1f8   : > { %3998 = vmatpush3.bf16.msra.mxu0 %v3995_v23 }
 0x1fa   : > { %v1116_v51 = vpop.f32.mrb[30].mxu1 }
 0x1fb   : > { %v1117_v53 = vadd.f32 %v1116_v51, %v4937_v42  ;;  %v4961_v45 = vpop.f32.mrb[31].mxu1  ;;  %v4051_v51 = vpack.c.bf16 %v1528_v19, %v1525_v9  ;;  %v1555_v9 = vld [vmem:[#allocation2 + $0x280] sm:$0xff]  ;;  %v1558_v19 = vld [vmem:[#allocation2 + $0x298] sm:$0xff] }
 0x1fd   : > { %v3999_v58 = vpack.c.bf16 %v1117_v53, %v1111_v44  ;;  %v1531_v53 = vld [vmem:[#allocation2 + $0x1c0] sm:$0xff] }
 0x1fe   : > { %v1122_v54 = vpop.f32.mrb[32].mxu1 }
 0x1ff   : > { %v4963_v60 = vpop.f32.mrb[33].mxu1  ;;  %4000 = vmatprep.subr.bf16.mxu0 %v3999_v58  ;;  %v1123_v0 = vadd.f32 %v1122_v54, %v4937_v42 }
 0x200   : > { %4002 = vmatpush3.bf16.msra.mxu0 %v3999_v58  ;;  %v1534_v58 = vld [vmem:[#allocation2 + $0x1d8] sm:$0xff] }
 0x202   : > { %v1128_v56 = vpop.f32.mrb[34].mxu1 }
 0x203   : > { %v1129_v61 = vadd.f32 %v1128_v56, %v4937_v42  ;;  %v4967_v8 = vpop.f32.mrb[35].mxu1  ;;  %v4055_v56 = vpack.c.bf16 %v1534_v58, %v1531_v53 }
 0x205   : > { %v4003_v25 = vpack.c.bf16 %v1129_v61, %v1123_v0  ;;  %v1537_v61 = vld [vmem:[#allocation2 + $0x1f0] sm:$0xff] }
 0x206   : > { %v1134_v14 = vpop.f32.mrb[36].mxu1 }
 0x207   : > { %v4969_v26 = vpop.f32.mrb[37].mxu1  ;;  %4004 = vmatprep.subr.bf16.mxu0 %v4003_v25  ;;  %v1135_v29 = vadd.f32 %v1134_v14, %v4937_v42 }
 0x208   : > { %4006 = vmatpush3.bf16.msra.mxu0 %v4003_v25  ;;  %v1540_v25 = vld [vmem:[#allocation2 + $0x208] sm:$0xff] }
 0x20a   : > { %v1140_v6 = vpop.f32.mrb[38].mxu1 }
 0x20b   : > { %v1141_v37 = vadd.f32 %v1140_v6, %v4937_v42  ;;  %v4973_v38 = vpop.f32.mrb[39].mxu1 }
 0x20d   : > { %v4007_v12 = vpack.c.bf16 %v1141_v37, %v1135_v29  ;;  %v1543_v29 = vld [vmem:[#allocation2 + $0x220] sm:$0xff]  ;;  %v1546_v37 = vld [vmem:[#allocation2 + $0x238] sm:$0xff] }
 0x20e   : > { %v1146_v41 = vpop.f32.mrb[40].mxu1 }
 0x20f   : > { %v4975_v7 = vpop.f32.mrb[41].mxu1  ;;  %4008 = vmatprep.subr.bf16.mxu0 %v4007_v12  ;;  %v1147_v52 = vadd.f32 %v1146_v41, %v4937_v42  ;;  %v4063_v41 = vpack.c.bf16 %v1546_v37, %v1543_v29  ;;  %v1559_v37 = vld [vmem:[#allocation2 + $0x2a0] sm:$0xff] }
 0x210   : > { %4010 = vmatpush3.bf16.msra.mxu0 %v4007_v12 }
 0x212   : > { %v1152_v49 = vpop.f32.mrb[42].mxu1 }
 0x213   : > { %v1153_v55 = vadd.f32 %v1152_v49, %v4937_v42  ;;  %v4979_v57 = vpop.f32.mrb[43].mxu1 }
 0x215   : > { %v4011_v30 = vpack.c.bf16 %v1153_v55, %v1147_v52  ;;  %v1549_v52 = vld [vmem:[#allocation2 + $0x250] sm:$0xff]  ;;  %v1552_v55 = vld [vmem:[#allocation2 + $0x268] sm:$0xff] }
 0x216   : > { %v1158_v59 = vpop.f32.mrb[44].mxu1 }
 0x217   : > { %v4981_v62 = vpop.f32.mrb[45].mxu1  ;;  %4012 = vmatprep.subr.bf16.mxu0 %v4011_v30  ;;  %v1159_v18 = vadd.f32 %v1158_v59, %v4937_v42  ;;  %v4067_v59 = vpack.c.bf16 %v1552_v55, %v1549_v52  ;;  %v1561_v52 = vld [vmem:[#allocation2 + $0x2b0] sm:$0xff] }
 0x218   : > { %4014 = vmatpush3.bf16.msra.mxu0 %v4011_v30 }
 0x21a   : > { %v1164_v4 = vpop.f32.mrb[46].mxu1 }
 0x21b   : > { %v1165_v46 = vadd.f32 %v1164_v4, %v4937_v42  ;;  %v4985_v23 = vpop.f32.mrb[47].mxu1  ;;  %v4059_v42 = vpack.c.bf16 %v1540_v25, %v1537_v61  ;;  %v1560_v25 = vld [vmem:[#allocation2 + $0x2a8] sm:$0xff] }
 0x21d   : > { %v4015_v47 = vpack.c.bf16 %v1165_v46, %v1159_v18  ;;  %v4071_v46 = vpack.c.bf16 %v1558_v19, %v1555_v9  ;;  %v1566_v19 = vld [vmem:[#allocation2 + $0x2d8] sm:$0xff] }
 0x21e   : > { %v4987_v44 = vpop.f32.mrb[48].mxu1 }
 0x21f   : > { %v4989_v54 = vpop.f32.mrb[49].mxu1  ;;  %4016 = vmatprep.subr.bf16.mxu0 %v4015_v47 }
 0x220   : > { %4018 = vmatpush3.bf16.msra.mxu0 %v4015_v47 }
 0x221   : > { %4052 = vmatprep.subr.bf16.mxu0 %v4051_v51 }
 0x222   : > { %v4991_v0 = vpop.f32.mrb[50].mxu1 }
 0x223   : > { %v4993_v14 = vpop.f32.mrb[51].mxu1  ;;  %3539 = vmatmul.mubr.f32.vlgmr.msra.gmra.mrb[32].mxu0 %v4882_v63 }
 0x224   : > { %3541 = vmatprep.mubr.f32.mxu0 %v4887_v5  ;;  %4054 = vmatpush3.bf16.msra.mxu0 %v4051_v51 }
 0x225   : > { %4056 = vmatprep.subr.bf16.mxu0 %v4055_v56 }
 0x226   : > { %v4997_v6 = vpop.f32.mrb[52].mxu1 }
 0x227   : > { %v4999_v12 = vpop.f32.mrb[53].mxu1  ;;  %3542 = vmatmul.mubr.f32.gmra.mrb[34].mxu0 %v4890_v20 }
 0x228   : > { %3544 = vmatprep.mubr.f32.mxu0 %v4893_v27  ;;  %4058 = vmatpush3.bf16.msra.mxu0 %v4055_v56 }
 0x229   : > { %4060 = vmatprep.subr.bf16.mxu0 %v4059_v42 }
 0x22a   : > { %v5003_v49 = vpop.f32.mrb[54].mxu1 }
 0x22b   : > { %v5005_v30 = vpop.f32.mrb[55].mxu1  ;;  %3545 = vmatmul.mubr.f32.gmra.mrb[36].mxu0 %v4896_v34 }
 0x22c   : > { %3547 = vmatprep.mubr.f32.mxu0 %v4899_v31  ;;  %4062 = vmatpush3.bf16.msra.mxu0 %v4059_v42  ;;  %v1563_v42 = vld [vmem:[#allocation2 + $0x2c0] sm:$0xff] }
 0x22d   : > { %4064 = vmatprep.subr.bf16.mxu0 %v4063_v41  ;;  %v4043_v29 = vpack.c.bf16 %v1563_v42, %v1560_v25  ;;  %v5034_v42 = vpop.xlane.xlu0 %698 }
 0x22e   : > { %v5009_v4 = vpop.f32.mrb[56].mxu1  ;;  %5720 = vst [vmem:[#allocation15_spill] sm:$0xff] %v5034_v42 }
 0x22f   : > { %v5011_v18 = vpop.f32.mrb[57].mxu1  ;;  %3548 = vmatmul.mubr.f32.gmra.mrb[38].mxu0 %v4902_v39  ;;  %4044 = vmatprep.subr.bf16.mxu1 %v4043_v29  ;;  %v5038_v29 = vrot.slane %v4933_v40, %v4450_v2 }
 0x230   : > { %3550 = vmatprep.mubr.f32.mxu0 %v4906_v36  ;;  %4066 = vmatpush3.bf16.msra.mxu0 %v4063_v41  ;;  %v1562_v41 = vld [vmem:[#allocation2 + $0x2b8] sm:$0xff] }
 0x231   : > { %4068 = vmatprep.subr.bf16.mxu0 %v4067_v59  ;;  %v4045_v55 = vpack.c.bf16 %v1562_v41, %v1559_v37  ;;  %v5041_v37 = vsub.s32 2, %v4439_v1  ;;  %v5043_v41 = vpop.xlane.xlu1 %702 }
 0x232   : > { %v5015_v47 = vpop.f32.mrb[58].mxu1 }
 0x233   : > { %v5017_v51 = vpop.f32.mrb[59].mxu1  ;;  %3551 = vmatmul.mubr.f32.gmra.mrb[40].mxu0 %v4909_v21  ;;  %4046 = vmatpush1.bf16.msra.mxu1 %v4045_v55 }
 0x234   : > { %3553 = vmatprep.mubr.f32.mxu0 %v4912_v13  ;;  %4070 = vmatpush3.bf16.msra.mxu0 %v4067_v59  ;;  %v1564_v59 = vld [vmem:[#allocation2 + $0x2c8] sm:$0xff] }
 0x235   : > { %4072 = vmatprep.subr.bf16.mxu0 %v4071_v46  ;;  %v4075_v9 = vpack.c.bf16 %v1564_v59, %v1561_v52  ;;  %v1089_v52 = vadd.f32 %v4945_v11, %v5038_v29  ;;  %v5060_v55 = vpop.xlane.xlu1 %704 }
 0x236   : > { %v5021_v53 = vpop.f32.mrb[60].mxu1 }
 0x237   : > { %v5023_v58 = vpop.f32.mrb[61].mxu1  ;;  %3554 = vmatmul.mubr.f32.gmra.mrb[42].mxu0 %v4915_v43  ;;  %v1570_v43 = vld [vmem:[#allocation2 + $0x2f8] sm:$0xff] }
 0x238   : > { %3556 = vmatprep.mubr.f32.mxu0 %v4918_v22  ;;  %4074 = vmatpush3.bf16.msra.mxu0 %v4071_v46  ;;  %v1569_v46 = vld [vmem:[#allocation2 + $0x2f0] sm:$0xff]  ;;  %v1568_v22 = vld [vmem:[#allocation2 + $0x2e8] sm:$0xff] }
 0x239   : > { %4076 = vmatprep.subr.bf16.mxu0 %v4075_v9  ;;  %v4047_v35 = vpack.c.bf16 %v1569_v46, %v1566_v19  ;;  %v5072_v1 = vpop.xlane.xlu1 %708 }
 0x23a   : > { %v5027_v56 = vpop.f32.mrb[62].mxu1 }
 0x23b   : > { %v5029_v61 = vpop.f32.mrb[63].mxu1  ;;  %3557 = vmatmul.mubr.f32.gmra.mrb[44].mxu0 %v4921_v16  ;;  %v1565_v16 = vld [vmem:[#allocation2 + $0x2d0] sm:$0xff]  ;;  %4048 = vmatprep.subr.bf16.mxu1 %v4047_v35  ;;  %v1077_v35 = vadd.f32 %v4939_v48, %v5038_v29 }
 0x23c   : > { %3559 = vmatprep.mubr.f32.mxu0 %v4924_v50  ;;  %v1567_v50 = vld [vmem:[#allocation2 + $0x2e0] sm:$0xff]  ;;  %4078 = vmatpush3.bf16.msra.mxu0 %v4075_v9 }
 0x23d   : > { %v4079_v25 = vpack.c.bf16 %v1570_v43, %v1567_v50  ;;  %v5049_v43 = vpop.xlane.xlu0 %700  ;;  %v1095_v50 = vadd.f32 %v4949_v17, %v5038_v29  ;;  %v1459_v59 = vmul.f32 %v1077_v35, %v5034_v42  ;;  %v1107_v17 = vadd.f32 %v4955_v32, %v5038_v29 }
 0x23f   : > { %3560 = vmatmul.mubr.f32.gmra.mrb[46].mxu0 %v4927_v10  ;;  %v4049_v10 = vpack.c.bf16 %v1568_v22, %v1565_v16  ;;  %4080 = vmatprep.subr.bf16.mxu0 %v4079_v25  ;;  %v1083_v22 = vadd.f32 %v4943_v28, %v5038_v29  ;;  %v5053_v16 = vrot.slane %v4933_v40, %v5041_v37 }
 0x240   : > { %4082 = vmatpush3.bf16.msra.mxu0 %v4079_v25  ;;  %v1462_v11 = vmul.f32 %v1095_v50, %v5060_v55 }
 0x241   : > { %4050 = vmatpush1.bf16.msra.mxu1 %v4049_v10  ;;  %v1460_v10 = vmul.f32 %v1083_v22, %v5049_v43  ;;  %v1241_v48 = vadd.f32 %v4987_v44, %v5053_v16  ;;  %v1236_v40 = vadd.f32 %v4989_v54, %v5053_v16  ;;  %v1101_v22 = vadd.f32 %v4951_v15, %v5038_v29 }
 0x242   : > { %v1461_v44 = vmul.f32 %v1089_v52, %v5043_v41  ;;  %v1251_v54 = vadd.f32 %v4991_v0, %v5053_v16  ;;  %v1246_v32 = vadd.f32 %v4993_v14, %v5053_v16  ;;  %v1119_v15 = vadd.f32 %v4961_v45, %v5038_v29 }
 0x243   : > { %v1464_v52 = vmul.f32 %v1107_v17, %v5072_v1  ;;  %v1261_v45 = vadd.f32 %v4997_v6, %v5053_v16  ;;  %v5721_v17 = vmov 0.0   ;;  %v1125_v6 = vadd.f32 %v4963_v60, %v5038_v29 }
 0x244   : > { %v1266_v60 = vadd.f32 %v5005_v30, %v5053_v16 }
 0x2f6   : > { %v3540_v28 = vpop.f32.mrb[32].mxu0 }
 0x2f7   : > { %v1476_v9 = vsub.f32 %v3540_v28, %v1460_v10  ;;  %v1380_v19 = vpop.f32.mrb[33].mxu0  ;;  %v5075_v10 = vpop.xlane.xlu0 %706 }
 0x2f8   : > { %v1475_v46 = vsub.f32 %v1380_v19, %v1459_v59  ;;  %v1463_v14 = vmul.f32 %v1101_v22, %v5075_v10 }
 0x2f9   : > { %v1492_v25 = vadd.f32 %v1476_v9, %v1241_v48 }
 0x2fa   : > { %v1491_v35 = vadd.f32 %v1475_v46, %v1236_v40  ;;  %v3543_v42 = vpop.f32.mrb[34].mxu0  ;;  %v1113_v40 = vadd.f32 %v4957_v33, %v5038_v29  ;;  %v5088_v46 = vpop.xlane.xlu1 %712  ;;  %v1256_v33 = vadd.f32 %v4999_v12, %v5053_v16 }
 0x2fb   : > { %v1478_v28 = vsub.f32 %v3543_v42, %v1462_v11  ;;  %v1390_v59 = vpop.f32.mrb[35].mxu0  ;;  %v1508_v9 = vmax.f32 %v1492_v25, 0.0  ;;  %v5091_v11 = vpop.xlane.xlu0 %710 }
 0x2fc   : > { %v1507_v50 = vmax.f32 %v1491_v35, 0.0  ;;  %v1477_v48 = vsub.f32 %v1390_v59, %v1461_v44  ;;  %v1465_v12 = vmul.f32 %v1113_v40, %v5091_v11 }
 0x2fd   : > { %v5083_v19 = vadd.f32 %v1478_v28, %v1251_v54  ;;  %v1131_v28 = vadd.f32 %v4967_v8, %v5038_v29  ;;  %v1271_v8 = vadd.f32 %v5003_v49, %v5053_v16  ;;  %v1137_v49 = vadd.f32 %v4969_v26, %v5038_v29 }
 0x2fe   : > { %v1493_v0 = vadd.f32 %v1477_v48, %v1246_v32  ;;  %v3546_v42 = vpop.f32.mrb[36].mxu0  ;;  %1654 = vmatmul.mubr.f32.vlgmr.msra.gmra.mrb[64].mxu1 %v1507_v50  ;;  %3594 = vmatprep.mubr.f32.mxu0 %v1507_v50  ;;  %v1466_v32 = vmul.f32 %v1119_v15, %v5088_v46  ;;  %v5106_v50 = vpop.xlane.xlu1 %716  ;;  %v1276_v26 = vadd.f32 %v5011_v18, %v5053_v16 }
 0x2ff   : > { %v1480_v25 = vsub.f32 %v3546_v42, %v1464_v52  ;;  %v1400_v35 = vpop.f32.mrb[37].mxu0  ;;  %3595 = vmatmul.mubr.f32.vlgmr.msra.gmra.mrb[48].mxu0 %v1508_v9  ;;  %1659 = vmatprep.mubr.f32.mxu1 %v5721_v17  ;;  %v1510_v22 = vmax.f32 %v5083_v19, 0.0 }
 0x300   : > { %v1509_v44 = vmax.f32 %v1493_v0, 0.0  ;;  %v1479_v54 = vsub.f32 %v1400_v35, %v1463_v14  ;;  %v5109_v0 = vpop.xlane.xlu0 %714 }
 0x301   : > { %v5101_v59 = vadd.f32 %v1480_v25, %v1261_v45  ;;  %v1468_v25 = vmul.f32 %v1131_v28, %v5106_v50  ;;  %v1467_v30 = vmul.f32 %v1125_v6, %v5109_v0  ;;  %v1155_v6 = vadd.f32 %v4979_v57, %v5038_v29 }
 0x302   : > { %v1495_v48 = vadd.f32 %v1479_v54, %v1256_v33  ;;  %v3549_v52 = vpop.f32.mrb[38].mxu0  ;;  %1660 = vmatmul.mubr.f32.gmra.mrb[66].mxu1 %v1508_v9  ;;  %3597 = vmatprep.mubr.f32.mxu0 %v1509_v44  ;;  %v1143_v9 = vadd.f32 %v4973_v38, %v5038_v29  ;;  %v5124_v35 = vpop.xlane.xlu1 %720  ;;  %v1281_v38 = vadd.f32 %v5009_v4, %v5053_v16 }
 0x303   : > { %v1482_v19 = vsub.f32 %v3549_v52, %v1466_v32  ;;  %v1410_v42 = vpop.f32.mrb[39].mxu0  ;;  %3598 = vmatmul.mubr.f32.gmra.mrb[50].mxu0 %v1510_v22  ;;  %1665 = vmatprep.mubr.f32.mxu1 %v5721_v17  ;;  %v1512_v40 = vmax.f32 %v5101_v59, 0.0  ;;  %v1291_v57 = vadd.f32 %v5015_v47, %v5053_v16 }
 0x304   : > { %v1511_v15 = vmax.f32 %v1495_v48, 0.0  ;;  %v1481_v14 = vsub.f32 %v1410_v42, %v1465_v12  ;;  %v5129_v32 = vpop.xlane.xlu0 %718  ;;  %v1470_v4 = vmul.f32 %v1143_v9, %v5124_v35 }
 0x305   : > { %v5119_v45 = vadd.f32 %v1482_v19, %v1271_v8  ;;  %5722 = vst [vmem:[#allocation16_spill] sm:$0xff] %v5129_v32  ;;  %v1149_v19 = vadd.f32 %v4975_v7, %v5038_v29  ;;  %v1286_v7 = vadd.f32 %v5017_v51, %v5053_v16 }
 0x306   : > { %v5126_v33 = vadd.f32 %v1481_v14, %v1266_v60  ;;  %v3552_v54 = vpop.f32.mrb[40].mxu0  ;;  %1666 = vmatmul.mubr.f32.gmra.mrb[68].mxu1 %v1509_v44  ;;  %3600 = vmatprep.mubr.f32.mxu0 %v1511_v15  ;;  %v5147_v42 = vpop.xlane.xlu1 %724  ;;  %v1469_v14 = vmul.f32 %v1137_v49, %v5129_v32  ;;  %v1167_v49 = vadd.f32 %v4985_v23, %v5038_v29  ;;  %v2115_v32 = vld [vmem:[#allocation2 + $0x358] sm:$0xff] }
 0x307   : > { %v1484_v48 = vsub.f32 %v3552_v54, %v1468_v25  ;;  %v1420_v52 = vpop.f32.mrb[41].mxu0  ;;  %3601 = vmatmul.mubr.f32.gmra.mrb[52].mxu0 %v1512_v40  ;;  %1671 = vmatprep.mubr.f32.mxu1 %v5721_v17  ;;  %v1514_v12 = vmax.f32 %v5119_v45, 0.0  ;;  %5723 = vst [vmem:[#allocation17_spill] sm:$0xff] %v5147_v42  ;;  %v1472_v47 = vmul.f32 %v1155_v6, %v5147_v42  ;;  %v2104_v45 = vld [vmem:[#allocation2 + $0x300] sm:$0xff] }
 0x308   : > { %v1513_v44 = vmax.f32 %v5126_v33, 0.0  ;;  %v1483_v28 = vsub.f32 %v1420_v52, %v1467_v30  ;;  %v5152_v25 = vpop.xlane.xlu0 %722  ;;  %v1301_v23 = vadd.f32 %v5021_v53, %v5053_v16 }
 0x309   : > { %v5142_v8 = vadd.f32 %v1484_v48, %v1281_v38  ;;  %5724 = vst [vmem:[#allocation18_spill] sm:$0xff] %v5152_v25  ;;  %v1161_v48 = vadd.f32 %v4981_v62, %v5038_v29  ;;  %v1471_v51 = vmul.f32 %v1149_v19, %v5152_v25  ;;  %v1296_v62 = vadd.f32 %v5023_v58, %v5053_v16 }
 0x30a   : > { %v5149_v60 = vadd.f32 %v1483_v28, %v1276_v26  ;;  %v3555_v18 = vpop.f32.mrb[42].mxu0  ;;  %1672 = vmatmul.mubr.f32.gmra.mrb[70].mxu1 %v1510_v22  ;;  %3603 = vmatprep.mubr.f32.mxu0 %v1513_v44  ;;  %v5168_v52 = vpop.xlane.xlu1 %728  ;;  %v1306_v58 = vadd.f32 %v5029_v61, %v5053_v16  ;;  %v2105_v61 = vld [vmem:[#allocation2 + $0x308] sm:$0xff] }
 0x30b   : > { %v1486_v33 = vsub.f32 %v3555_v18, %v1470_v4  ;;  %v1430_v54 = vpop.f32.mrb[43].mxu0  ;;  %3604 = vmatmul.mubr.f32.gmra.mrb[54].mxu0 %v1514_v12  ;;  %1677 = vmatprep.mubr.f32.mxu1 %v5721_v17  ;;  %v1516_v30 = vmax.f32 %v5142_v8, 0.0  ;;  %5725 = vst [vmem:[#allocation19_spill] sm:$0xff] %v5168_v52 }
 0x30c   : > { %v1515_v22 = vmax.f32 %v5149_v60, 0.0  ;;  %v1485_v9 = vsub.f32 %v1430_v54, %v1469_v14  ;;  %v5171_v4 = vpop.xlane.xlu0 %726 }
 0x30d   : > { %v1502_v38 = vadd.f32 %v1486_v33, %v1291_v57  ;;  %5726 = vst [vmem:[#allocation20_spill] sm:$0xff] %v5171_v4  ;;  %v1473_v53 = vmul.f32 %v1161_v48, %v5171_v4  ;;  %v1311_v33 = vadd.f32 %v5027_v56, %v5053_v16  ;;  %v2108_v16 = vld [vmem:[#allocation2 + $0x320] sm:$0xff]  ;;  %v2114_v48 = vld [vmem:[#allocation2 + $0x350] sm:$0xff] }
 0x30e   : > { %v1501_v26 = vadd.f32 %v1485_v9, %v1286_v7  ;;  %v3558_v28 = vpop.f32.mrb[44].mxu0  ;;  %1678 = vmatmul.mubr.f32.gmra.mrb[72].mxu1 %v1511_v15  ;;  %3606 = vmatprep.mubr.f32.mxu0 %v1515_v22  ;;  %v1474_v15 = vmul.f32 %v1167_v49, %v5168_v52 }
 0x30f   : > { %v1488_v8 = vsub.f32 %v3558_v28, %v1472_v47  ;;  %v1440_v60 = vpop.f32.mrb[45].mxu0  ;;  %3607 = vmatmul.mubr.f32.gmra.mrb[56].mxu0 %v1516_v30  ;;  %1683 = vmatprep.mubr.f32.mxu1 %v5721_v17  ;;  %v1518_v18 = vmax.f32 %v1502_v38, 0.0 }
 0x310   : > { %v1517_v29 = vmax.f32 %v1501_v26, 0.0  ;;  %v1487_v6 = vsub.f32 %v1440_v60, %v1471_v51  ;;  %v2110_v26 = vld [vmem:[#allocation2 + $0x330] sm:$0xff]  ;;  %v2113_v51 = vld [vmem:[#allocation2 + $0x348] sm:$0xff]  ;;  %v2120_v60 = vld [vmem:[#allocation2 + $0x380] sm:$0xff] }
 0x311   : > { %v1504_v14 = vadd.f32 %v1488_v8, %v1301_v23  ;;  %v4121_v23 = vpack.c.bf16 %v2113_v51, %v2110_v26  ;;  %v2117_v8 = vld [vmem:[#allocation2 + $0x368] sm:$0xff] }
 0x312   : > { %v1503_v19 = vadd.f32 %v1487_v6, %v1296_v62  ;;  %v3561_v57 = vpop.f32.mrb[46].mxu0  ;;  %1684 = vmatmul.mubr.f32.gmra.mrb[74].mxu1 %v1512_v40  ;;  %3609 = vmatprep.mubr.f32.mxu0 %v1517_v29  ;;  %v4123_v62 = vpack.c.bf16 %v2120_v60, %v2117_v8  ;;  %v2119_v6 = vld [vmem:[#allocation2 + $0x378] sm:$0xff] }
 0x313   : > { %v1490_v54 = vsub.f32 %v3561_v57, %v1474_v15  ;;  %v1450_v7 = vpop.f32.mrb[47].mxu0  ;;  %3610 = vmatmul.mubr.f32.gmra.mrb[58].mxu0 %v1518_v18  ;;  %1689 = vmatprep.mubr.f32.mxu1 %v5721_v17  ;;  %v1520_v38 = vmax.f32 %v1504_v14, 0.0  ;;  %v2123_v15 = vld [vmem:[#allocation2 + $0x398] sm:$0xff]  ;;  %v2122_v57 = vld [vmem:[#allocation2 + $0x390] sm:$0xff] }
 0x314   : > { %v1519_v9 = vmax.f32 %v1503_v19, 0.0  ;;  %v1489_v49 = vsub.f32 %v1450_v7, %v1473_v53  ;;  %v2125_v53 = vld [vmem:[#allocation2 + $0x3a8] sm:$0xff] }
 0x315   : > { %v1506_v47 = vadd.f32 %v1490_v54, %v1311_v33  ;;  %v2129_v33 = vld [vmem:[#allocation2 + $0x3c8] sm:$0xff]  ;;  %v2132_v54 = vld [vmem:[#allocation2 + $0x3e0] sm:$0xff]  ;;  %v4129_v7 = vpack.c.bf16 %v2125_v53, %v2122_v57 }
 0x316   : > { %v1505_v59 = vadd.f32 %v1489_v49, %v1306_v58  ;;  %1690 = vmatmul.mubr.f32.gmra.mrb[76].mxu1 %v1513_v44  ;;  %3612 = vmatprep.mubr.f32.mxu0 %v1519_v9  ;;  %v4115_v44 = vpack.c.bf16 %v2108_v16, %v2105_v61  ;;  %v4131_v58 = vpack.c.bf16 %v2132_v54, %v2129_v33  ;;  %v2131_v49 = vld [vmem:[#allocation2 + $0x3d8] sm:$0xff]  ;;  %v2137_v61 = vld [vmem:[#allocation2 + $0x408] sm:$0xff] }
 0x317   : > { %3613 = vmatmul.mubr.f32.gmra.mrb[60].mxu0 %v1520_v38  ;;  %1695 = vmatprep.mubr.f32.mxu1 %v5721_v17  ;;  %v1522_v56 = vmax.f32 %v1506_v47, 0.0  ;;  %v2138_v47 = vld [vmem:[#allocation2 + $0x410] sm:$0xff] }
 0x318   : > { %v1521_v40 = vmax.f32 %v1505_v59, 0.0  ;;  %4116 = vmatprep.subr.bf16.mxu1 %v4115_v44 }
 0x31a   : > { %1696 = vmatmul.mubr.f32.gmra.mrb[78].mxu1 %v1514_v12  ;;  %3615 = vmatprep.mubr.f32.mxu0 %v1521_v40  ;;  %v2107_v12 = vld [vmem:[#allocation2 + $0x318] sm:$0xff] }
 0x31b   : > { %3616 = vmatmul.mubr.f32.gmra.mrb[62].mxu0 %v1522_v56  ;;  %1701 = vmatprep.mubr.f32.mxu1 %v5721_v17 }
 0x31c   : > { %3650 = vmatprep.mubr.f32.mxu0 %v4876_v24 }
 0x31e   : > { %1702 = vmatmul.mubr.f32.gmra.mrb[80].mxu1 %v1515_v22  ;;  %v4117_v22 = vpack.c.bf16 %v2107_v12, %v2104_v45  ;;  %v5203_v45 = vld [vmem:[%s5670_s3 + $0x1a] ss:$8 sm:$0x7] }
 0x31f   : > { %1707 = vmatprep.mubr.f32.mxu1 %v5721_v17  ;;  %v5207_v12 = vrot.slane %v5203_v45, %v4453_v3 }
 0x320   : > { %4118 = vmatpush1.bf16.msra.mxu1 %v4117_v22 }
 0x322   : > { %1708 = vmatmul.mubr.f32.gmra.mrb[82].mxu1 %v1516_v30  ;;  %v2111_v30 = vld [vmem:[#allocation2 + $0x338] sm:$0xff] }
 0x323   : > { %1713 = vmatprep.mubr.f32.mxu1 %v5721_v17  ;;  %v4119_v28 = vpack.c.bf16 %v2114_v48, %v2111_v30 }
 0x325   : > { %4120 = vmatprep.subr.bf16.mxu1 %v4119_v28 }
 0x326   : > { %1714 = vmatmul.mubr.f32.gmra.mrb[84].mxu1 %v1517_v29  ;;  %v2116_v29 = vld [vmem:[#allocation2 + $0x360] sm:$0xff] }
 0x327   : > { %1719 = vmatprep.mubr.f32.mxu1 %v5721_v17  ;;  %4122 = vmatpush1.bf16.msra.mxu1 %v4121_v23  ;;  %v4125_v14 = vpack.c.bf16 %v2119_v6, %v2116_v29 }
 0x328   : > { %4124 = vmatprep.subr.bf16.mxu1 %v4123_v62 }
 0x32a   : > { %1720 = vmatmul.mubr.f32.gmra.mrb[86].mxu1 %v1518_v18  ;;  %v2126_v18 = vld [vmem:[#allocation2 + $0x3b0] sm:$0xff] }
 0x32b   : > { %1725 = vmatprep.mubr.f32.mxu1 %v5721_v17  ;;  %v4127_v19 = vpack.c.bf16 %v2126_v18, %v2123_v15  ;;  %4126 = vmatpush1.bf16.msra.mxu1 %v4125_v14 }
 0x32d   : > { %4128 = vmatprep.subr.bf16.mxu1 %v4127_v19 }
 0x32e   : > { %1726 = vmatmul.mubr.f32.gmra.mrb[88].mxu1 %v1519_v9  ;;  %v2128_v9 = vld [vmem:[#allocation2 + $0x3c0] sm:$0xff] }
 0x32f   : > { %1731 = vmatprep.mubr.f32.mxu1 %v5721_v17  ;;  %4130 = vmatpush1.bf16.msra.mxu1 %v4129_v7  ;;  %v4133_v59 = vpack.c.bf16 %v2131_v49, %v2128_v9 }
 0x330   : > { %4132 = vmatprep.subr.bf16.mxu1 %v4131_v58 }
 0x332   : > { %1732 = vmatmul.mubr.f32.gmra.mrb[90].mxu1 %v1520_v38  ;;  %v2135_v38 = vld [vmem:[#allocation2 + $0x3f8] sm:$0xff] }
 0x333   : > { %1737 = vmatprep.mubr.f32.mxu1 %v5721_v17  ;;  %4134 = vmatpush1.bf16.msra.mxu1 %v4133_v59 }
 0x336   : > { %1738 = vmatmul.mubr.f32.gmra.mrb[92].mxu1 %v1521_v40  ;;  %v4135_v40 = vpack.c.bf16 %v2138_v47, %v2135_v38 }
 0x337   : > { %1743 = vmatprep.mubr.f32.mxu1 %v5721_v17 }
 0x338   : > { %4136 = vmatprep.subr.bf16.mxu1 %v4135_v40 }
 0x33a   : > { %1744 = vmatmul.mubr.f32.gmra.mrb[94].mxu1 %v1522_v56  ;;  %v2134_v56 = vld [vmem:[#allocation2 + $0x3f0] sm:$0xff] }
 0x33b   : > { %2234 = vmatprep.mubr.f32.mxu1 %v5721_v17  ;;  %v4137_v16 = vpack.c.bf16 %v2137_v61, %v2134_v56 }
 0x33d   : > { %4138 = vmatpush1.bf16.msra.mxu1 %v4137_v16 }
 0x3d1   : > { %v1655_v44 = vpop.f32.mrb[64].mxu1 }
 0x3d2   : > { %v5209_v22 = vpop.f32.mrb[65].mxu1  ;;  %v5211_v30 = vpop.f32.mrb[48].mxu0  ;;  %v1656_v28 = vadd.f32 %v1655_v44, %v5207_v12 }
 0x3d3   : > { %v5213_v48 = vpop.f32.mrb[49].mxu0 }
 0x3d5   : > { %v1661_v26 = vpop.f32.mrb[66].mxu1 }
 0x3d6   : > { %v1662_v51 = vadd.f32 %v1661_v26, %v5207_v12  ;;  %v5217_v23 = vpop.f32.mrb[67].mxu1  ;;  %v5219_v8 = vpop.f32.mrb[50].mxu0 }
 0x3d7   : > { %v5221_v60 = vpop.f32.mrb[51].mxu0 }
 0x3d8   : > { %v4083_v62 = vpack.c.bf16 %v1662_v51, %v1656_v28 }
 0x3d9   : > { %v1667_v29 = vpop.f32.mrb[68].mxu1 }
 0x3da   : > { %v5223_v6 = vpop.f32.mrb[69].mxu1  ;;  %v5225_v15 = vpop.f32.mrb[52].mxu0  ;;  %4084 = vmatprep.subr.bf16.mxu0 %v4083_v62  ;;  %v1668_v19 = vadd.f32 %v1667_v29, %v5207_v12 }
 0x3db   : > { %v5227_v18 = vpop.f32.mrb[53].mxu0  ;;  %4086 = vmatpush3.bf16.msra.mxu0 %v4083_v62 }
 0x3dd   : > { %v1673_v14 = vpop.f32.mrb[70].mxu1 }
 0x3de   : > { %v1674_v57 = vadd.f32 %v1673_v14, %v5207_v12  ;;  %v5231_v53 = vpop.f32.mrb[71].mxu1  ;;  %v5233_v33 = vpop.f32.mrb[54].mxu0 }
 0x3df   : > { %v5235_v54 = vpop.f32.mrb[55].mxu0 }
 0x3e0   : > { %v4087_v7 = vpack.c.bf16 %v1674_v57, %v1668_v19 }
 0x3e1   : > { %v1679_v58 = vpop.f32.mrb[72].mxu1 }
 0x3e2   : > { %v5237_v9 = vpop.f32.mrb[73].mxu1  ;;  %v5239_v49 = vpop.f32.mrb[56].mxu0  ;;  %4088 = vmatprep.subr.bf16.mxu0 %v4087_v7  ;;  %v1680_v59 = vadd.f32 %v1679_v58, %v5207_v12 }
 0x3e3   : > { %v5241_v38 = vpop.f32.mrb[57].mxu0  ;;  %4090 = vmatpush3.bf16.msra.mxu0 %v4087_v7 }
 0x3e5   : > { %v1685_v47 = vpop.f32.mrb[74].mxu1 }
 0x3e6   : > { %v1686_v40 = vadd.f32 %v1685_v47, %v5207_v12  ;;  %v5245_v56 = vpop.f32.mrb[75].mxu1  ;;  %v5247_v61 = vpop.f32.mrb[58].mxu0 }
 0x3e7   : > { %5727 = vst [vmem:[#allocation21_spill] sm:$0xff] %v5247_v61  ;;  %v5249_v16 = vpop.f32.mrb[59].mxu0 }
 0x3e8   : > { %5728 = vst [vmem:[#allocation22_spill] sm:$0xff] %v5249_v16  ;;  %v4091_v44 = vpack.c.bf16 %v1686_v40, %v1680_v59 }
 0x3e9   : > { %v1691_v26 = vpop.f32.mrb[76].mxu1 }
 0x3ea   : > { %v5251_v28 = vpop.f32.mrb[77].mxu1  ;;  %v5253_v51 = vpop.f32.mrb[60].mxu0  ;;  %4092 = vmatprep.subr.bf16.mxu0 %v4091_v44  ;;  %v1692_v14 = vadd.f32 %v1691_v26, %v5207_v12 }
 0x3eb   : > { %5729 = vst [vmem:[#allocation23_spill] sm:$0xff] %v5253_v51  ;;  %v5255_v62 = vpop.f32.mrb[61].mxu0  ;;  %4094 = vmatpush3.bf16.msra.mxu0 %v4091_v44 }
 0x3ec   : > { %5730 = vst [vmem:[#allocation24_spill] sm:$0xff] %v5255_v62 }
 0x3ed   : > { %v1697_v29 = vpop.f32.mrb[78].mxu1 }
 0x3ee   : > { %v1698_v19 = vadd.f32 %v1697_v29, %v5207_v12  ;;  %v5259_v57 = vpop.f32.mrb[79].mxu1  ;;  %v5261_v7 = vpop.f32.mrb[62].mxu0 }
 0x3ef   : > { %5731 = vst [vmem:[#allocation25_spill] sm:$0xff] %v5261_v7  ;;  %v5263_v58 = vpop.f32.mrb[63].mxu0 }
 0x3f0   : > { %5732 = vst [vmem:[#allocation26_spill] sm:$0xff] %v5263_v58  ;;  %v4095_v47 = vpack.c.bf16 %v1698_v19, %v1692_v14 }
 0x3f1   : > { %v1703_v59 = vpop.f32.mrb[80].mxu1 }
 0x3f2   : > { %v5265_v40 = vpop.f32.mrb[81].mxu1  ;;  %4096 = vmatprep.subr.bf16.mxu0 %v4095_v47  ;;  %v1704_v44 = vadd.f32 %v1703_v59, %v5207_v12 }
 0x3f3   : > { %4098 = vmatpush3.bf16.msra.mxu0 %v4095_v47 }
 0x3f5   : > { %v1709_v3 = vpop.f32.mrb[82].mxu1 }
 0x3f6   : > { %v1710_v24 = vadd.f32 %v1709_v3, %v5207_v12  ;;  %v5269_v26 = vpop.f32.mrb[83].mxu1 }
 0x3f8   : > { %v4099_v29 = vpack.c.bf16 %v1710_v24, %v1704_v44 }
 0x3f9   : > { %v1715_v4 = vpop.f32.mrb[84].mxu1 }
 0x3fa   : > { %v5271_v52 = vpop.f32.mrb[85].mxu1  ;;  %4100 = vmatprep.subr.bf16.mxu0 %v4099_v29  ;;  %v1716_v14 = vadd.f32 %v1715_v4, %v5207_v12 }
 0x3fb   : > { %4102 = vmatpush3.bf16.msra.mxu0 %v4099_v29 }
 0x3fd   : > { %v1721_v58 = vpop.f32.mrb[86].mxu1 }
 0x3fe   : > { %v1722_v19 = vadd.f32 %v1721_v58, %v5207_v12  ;;  %v5275_v7 = vpop.f32.mrb[87].mxu1 }
 0x400   : > { %v4103_v47 = vpack.c.bf16 %v1722_v19, %v1716_v14  ;;  %v2106_v14 = vld [vmem:[#allocation2 + $0x310] sm:$0xff]  ;;  %v2109_v19 = vld [vmem:[#allocation2 + $0x328] sm:$0xff] }
 0x401   : > { %v1727_v62 = vpop.f32.mrb[88].mxu1  ;;  %v4147_v61 = vpack.c.bf16 %v2109_v19, %v2106_v14  ;;  %v2136_v14 = vld [vmem:[#allocation2 + $0x400] sm:$0xff] }
 0x402   : > { %v5277_v59 = vpop.f32.mrb[89].mxu1  ;;  %4104 = vmatprep.subr.bf16.mxu0 %v4103_v47  ;;  %v1728_v24 = vadd.f32 %v1727_v62, %v5207_v12 }
 0x403   : > { %4106 = vmatpush3.bf16.msra.mxu0 %v4103_v47 }
 0x405   : > { %v1733_v3 = vpop.f32.mrb[90].mxu1 }
 0x406   : > { %v1734_v44 = vadd.f32 %v1733_v3, %v5207_v12  ;;  %v5281_v51 = vpop.f32.mrb[91].mxu1  ;;  %v2112_v3 = vld [vmem:[#allocation2 + $0x340] sm:$0xff] }
 0x408   : > { %v4107_v29 = vpack.c.bf16 %v1734_v44, %v1728_v24  ;;  %v4151_v24 = vpack.c.bf16 %v2115_v32, %v2112_v3  ;;  %v2118_v44 = vld [vmem:[#allocation2 + $0x370] sm:$0xff]  ;;  %v2133_v32 = vld [vmem:[#allocation2 + $0x3e8] sm:$0xff]  ;;  %v5736_v3 = vld [vmem:[#allocation12_spill] sm:$0xff] }
 0x409   : > { %v1739_v25 = vpop.f32.mrb[92].mxu1 }
 0x40a   : > { %v5283_v4 = vpop.f32.mrb[93].mxu1  ;;  %4108 = vmatprep.subr.bf16.mxu0 %v4107_v29  ;;  %v1740_v42 = vadd.f32 %v1739_v25, %v5207_v12 }
 0x40b   : > { %5733 = vst [vmem:[#allocation27_spill] sm:$0xff] %v5283_v4  ;;  %4110 = vmatpush3.bf16.msra.mxu0 %v4107_v29  ;;  %v2121_v4 = vld [vmem:[#allocation2 + $0x388] sm:$0xff]  ;;  %v2127_v29 = vld [vmem:[#allocation2 + $0x3b8] sm:$0xff] }
 0x40c   : > { %v4155_v25 = vpack.c.bf16 %v2121_v4, %v2118_v44  ;;  %v2139_v4 = vld [vmem:[#allocation2 + $0x418] sm:$0xff]  ;;  %v5738_v44 = vld [vmem:[#allocation14_spill] sm:$0xff] }
 0x40d   : > { %v1745_v58 = vpop.f32.mrb[94].mxu1  ;;  %v4167_v19 = vpack.c.bf16 %v2139_v4, %v2136_v14 }
 0x40e   : > { %v1746_v47 = vadd.f32 %v1745_v58, %v5207_v12  ;;  %v5287_v16 = vpop.f32.mrb[95].mxu1  ;;  %v2124_v12 = vld [vmem:[#allocation2 + $0x3a0] sm:$0xff]  ;;  %v2130_v58 = vld [vmem:[#allocation2 + $0x3d0] sm:$0xff] }
 0x410   : > { %v4111_v62 = vpack.c.bf16 %v1746_v47, %v1740_v42  ;;  %v4159_v42 = vpack.c.bf16 %v2127_v29, %v2124_v12  ;;  %v5734_v47 = vld [vmem:[#allocation10_spill] sm:$0xff]  ;;  %v2144_v12 = vld [vmem:[#allocation2 + $0x440] sm:$0xff] }
 0x412   : > { %4112 = vmatprep.subr.bf16.mxu0 %v4111_v62 }
 0x413   : > { %4114 = vmatpush3.bf16.msra.mxu0 %v4111_v62  ;;  %v5735_v62 = vld [vmem:[#allocation11_spill] sm:$0xff] }
 0x414   : > { %4148 = vmatprep.subr.bf16.mxu0 %v4147_v61 }
 0x416   : > { %3651 = vmatmul.mubr.f32.vlgmr.msra.gmra.mrb[64].mxu0 %v4882_v63 }
 0x417   : > { %3653 = vmatprep.mubr.f32.mxu0 %v4887_v5  ;;  %4150 = vmatpush3.bf16.msra.mxu0 %v4147_v61  ;;  %v4163_v61 = vpack.c.bf16 %v2133_v32, %v2130_v58  ;;  %v2143_v58 = vld [vmem:[#allocation2 + $0x438] sm:$0xff]  ;;  %v2142_v32 = vld [vmem:[#allocation2 + $0x430] sm:$0xff] }
 0x418   : > { %4152 = vmatprep.subr.bf16.mxu0 %v4151_v24 }
 0x41a   : > { %3654 = vmatmul.mubr.f32.gmra.mrb[66].mxu0 %v4890_v20 }
 0x41b   : > { %3656 = vmatprep.mubr.f32.mxu0 %v4893_v27  ;;  %4154 = vmatpush3.bf16.msra.mxu0 %v4151_v24  ;;  %v5737_v24 = vld [vmem:[#allocation13_spill] sm:$0xff] }
 0x41c   : > { %4156 = vmatprep.subr.bf16.mxu0 %v4155_v25 }
 0x41e   : > { %3657 = vmatmul.mubr.f32.gmra.mrb[68].mxu0 %v4896_v34 }
 0x41f   : > { %3659 = vmatprep.mubr.f32.mxu0 %v4899_v31  ;;  %4158 = vmatpush3.bf16.msra.mxu0 %v4155_v25  ;;  %v2141_v25 = vld [vmem:[#allocation2 + $0x428] sm:$0xff] }
 0x420   : > { %4160 = vmatprep.subr.bf16.mxu0 %v4159_v42  ;;  %v4139_v29 = vpack.c.bf16 %v2144_v12, %v2141_v25  ;;  %v5306_v12 = vrot.slane %v5203_v45, %v4450_v2 }
 0x422   : > { %3660 = vmatmul.mubr.f32.gmra.mrb[70].mxu0 %v4902_v39  ;;  %4140 = vmatprep.subr.bf16.mxu1 %v4139_v29  ;;  %v1664_v29 = vadd.f32 %v5217_v23, %v5306_v12 }
 0x423   : > { %3662 = vmatprep.mubr.f32.mxu0 %v4906_v36  ;;  %4162 = vmatpush3.bf16.msra.mxu0 %v4159_v42  ;;  %v2140_v42 = vld [vmem:[#allocation2 + $0x420] sm:$0xff] }
 0x424   : > { %4164 = vmatprep.subr.bf16.mxu0 %v4163_v61  ;;  %v4141_v14 = vpack.c.bf16 %v2143_v58, %v2140_v42 }
 0x426   : > { %3663 = vmatmul.mubr.f32.gmra.mrb[72].mxu0 %v4909_v21  ;;  %4142 = vmatpush1.bf16.msra.mxu1 %v4141_v14  ;;  %v2151_v21 = vld [vmem:[#allocation2 + $0x478] sm:$0xff] }
 0x427   : > { %3665 = vmatprep.mubr.f32.mxu0 %v4912_v13  ;;  %4166 = vmatpush3.bf16.msra.mxu0 %v4163_v61  ;;  %v2145_v61 = vld [vmem:[#allocation2 + $0x448] sm:$0xff] }
 0x428   : > { %4168 = vmatprep.subr.bf16.mxu0 %v4167_v19  ;;  %v4171_v4 = vpack.c.bf16 %v2145_v61, %v2142_v32  ;;  %v2149_v13 = vld [vmem:[#allocation2 + $0x468] sm:$0xff] }
 0x42a   : > { %3666 = vmatmul.mubr.f32.gmra.mrb[74].mxu0 %v5734_v47  ;;  %v2147_v47 = vld [vmem:[#allocation2 + $0x458] sm:$0xff] }
 0x42b   : > { %3668 = vmatprep.mubr.f32.mxu0 %v5735_v62  ;;  %4170 = vmatpush3.bf16.msra.mxu0 %v4167_v19  ;;  %v2150_v62 = vld [vmem:[#allocation2 + $0x470] sm:$0xff] }
 0x42c   : > { %4172 = vmatprep.subr.bf16.mxu0 %v4171_v4  ;;  %v4143_v19 = vpack.c.bf16 %v2150_v62, %v2147_v47  ;;  %v1658_v47 = vadd.f32 %v5209_v22, %v5306_v12  ;;  %v5314_v62 = vrot.slane %v5203_v45, %v5041_v37 }
 0x42e   : > { %3669 = vmatmul.mubr.f32.gmra.mrb[76].mxu0 %v5736_v3  ;;  %v2146_v3 = vld [vmem:[#allocation2 + $0x450] sm:$0xff]  ;;  %4144 = vmatprep.subr.bf16.mxu1 %v4143_v19  ;;  %v1822_v23 = vadd.f32 %v5211_v30, %v5314_v62  ;;  %v1817_v45 = vadd.f32 %v5213_v48, %v5314_v62  ;;  %v1832_v30 = vadd.f32 %v5219_v8, %v5314_v62 }
 0x42f   : > { %3671 = vmatprep.mubr.f32.mxu0 %v5737_v24  ;;  %v2148_v24 = vld [vmem:[#allocation2 + $0x460] sm:$0xff]  ;;  %4174 = vmatpush3.bf16.msra.mxu0 %v4171_v4  ;;  %v1827_v48 = vadd.f32 %v5221_v60, %v5314_v62  ;;  %v1842_v60 = vadd.f32 %v5225_v15, %v5314_v62  ;;  %v1706_v15 = vadd.f32 %v5265_v40, %v5306_v12 }
 0x430   : > { %v4175_v25 = vpack.c.bf16 %v2151_v21, %v2148_v24  ;;  %v1676_v21 = vadd.f32 %v5231_v53, %v5306_v12  ;;  %v1688_v53 = vadd.f32 %v5245_v56, %v5306_v12  ;;  %v1724_v40 = vadd.f32 %v5275_v7, %v5306_v12 }
 0x432   : > { %3672 = vmatmul.mubr.f32.gmra.mrb[78].mxu0 %v5738_v44  ;;  %v4145_v44 = vpack.c.bf16 %v2149_v13, %v2146_v3  ;;  %4176 = vmatprep.subr.bf16.mxu0 %v4175_v25  ;;  %v2041_v13 = vmul.f32 %v1664_v29, %v5049_v43  ;;  %v1670_v3 = vadd.f32 %v5223_v6, %v5306_v12 }
 0x433   : > { %4178 = vmatpush3.bf16.msra.mxu0 %v4175_v25  ;;  %v2043_v61 = vmul.f32 %v1676_v21, %v5060_v55  ;;  %v1682_v6 = vadd.f32 %v5237_v9, %v5306_v12  ;;  %v1700_v21 = vadd.f32 %v5259_v57, %v5306_v12  ;;  %v2045_v9 = vmul.f32 %v1688_v53, %v5072_v1 }
 0x434   : > { %4146 = vmatpush1.bf16.msra.mxu1 %v4145_v44  ;;  %v5739_v44 = vld [vmem:[#allocation15_spill] sm:$0xff]  ;;  %v2042_v25 = vmul.f32 %v1670_v3, %v5043_v41  ;;  %v1694_v3 = vadd.f32 %v5251_v28, %v5306_v12  ;;  %v1837_v57 = vadd.f32 %v5227_v18, %v5314_v62  ;;  %v1712_v28 = vadd.f32 %v5269_v26, %v5306_v12 }
 0x435   : > { %v2040_v42 = vmul.f32 %v1658_v47, %v5739_v44  ;;  %v2044_v8 = vmul.f32 %v1682_v6, %v5075_v10  ;;  %v2047_v6 = vmul.f32 %v1700_v21, %v5088_v46  ;;  %v1852_v18 = vadd.f32 %v5233_v33, %v5314_v62 }
 0x436   : > { %v1847_v26 = vadd.f32 %v5235_v54, %v5314_v62  ;;  %v2049_v21 = vmul.f32 %v1712_v28, %v5106_v50  ;;  %v1718_v33 = vadd.f32 %v5271_v52, %v5306_v12  ;;  %v2048_v54 = vmul.f32 %v1706_v15, %v5109_v0  ;;  %v5741_v28 = vld [vmem:[#allocation21_spill] sm:$0xff]  ;;  %v5742_v15 = vld [vmem:[#allocation22_spill] sm:$0xff] }
 0x4e9   : > { %v3652_v24 = vpop.f32.mrb[64].mxu0 }
 0x4ea   : > { %v2057_v58 = vsub.f32 %v3652_v24, %v2041_v13  ;;  %v1961_v22 = vpop.f32.mrb[65].mxu0 }
 0x4eb   : > { %v2056_v32 = vsub.f32 %v1961_v22, %v2040_v42 }
 0x4ec   : > { %v2073_v14 = vadd.f32 %v2057_v58, %v1822_v23 }
 0x4ed   : > { %v2072_v4 = vadd.f32 %v2056_v32, %v1817_v45  ;;  %v3655_v19 = vpop.f32.mrb[66].mxu0 }
 0x4ee   : > { %v2059_v29 = vsub.f32 %v3655_v19, %v2043_v61  ;;  %v1971_v47 = vpop.f32.mrb[67].mxu0  ;;  %v2089_v24 = vmax.f32 %v2073_v14, 0.0 }
 0x4ef   : > { %v2088_v13 = vmax.f32 %v2072_v4, 0.0  ;;  %v2058_v56 = vsub.f32 %v1971_v47, %v2042_v25  ;;  %v2046_v25 = vmul.f32 %v1694_v3, %v5091_v11 }
 0x4f0   : > { %v2075_v42 = vadd.f32 %v2059_v29, %v1832_v30 }
 0x4f1   : > { %v2074_v23 = vadd.f32 %v2058_v56, %v1827_v48  ;;  %v3658_v58 = vpop.f32.mrb[68].mxu0  ;;  %2235 = vmatmul.mubr.f32.vlgmr.msra.gmra.mrb[96].mxu1 %v2088_v13  ;;  %3706 = vmatprep.mubr.f32.mxu0 %v2088_v13 }
 0x4f2   : > { %v2061_v22 = vsub.f32 %v3658_v58, %v2045_v9  ;;  %v1981_v45 = vpop.f32.mrb[69].mxu0  ;;  %3707 = vmatmul.mubr.f32.vlgmr.msra.gmra.mrb[80].mxu0 %v2089_v24  ;;  %2240 = vmatprep.mubr.f32.mxu1 %v5721_v17  ;;  %v2091_v14 = vmax.f32 %v2075_v42, 0.0  ;;  %v1862_v9 = vadd.f32 %v5239_v49, %v5314_v62  ;;  %v2051_v49 = vmul.f32 %v1724_v40, %v5124_v35 }
 0x4f3   : > { %v2090_v32 = vmax.f32 %v2074_v23, 0.0  ;;  %v2060_v53 = vsub.f32 %v1981_v45, %v2044_v8  ;;  %v1857_v23 = vadd.f32 %v5241_v38, %v5314_v62  ;;  %v1736_v8 = vadd.f32 %v5281_v51, %v5306_v12  ;;  %v5740_v38 = vld [vmem:[#allocation16_spill] sm:$0xff] }
 0x4f4   : > { %v5349_v61 = vadd.f32 %v2061_v22, %v1842_v60  ;;  %v1730_v45 = vadd.f32 %v5277_v59, %v5306_v12  ;;  %v1748_v59 = vadd.f32 %v5287_v16, %v5306_v12  ;;  %v5747_v16 = vld [vmem:[#allocation24_spill] sm:$0xff] }
 0x4f5   : > { %v2076_v4 = vadd.f32 %v2060_v53, %v1837_v57  ;;  %v3661_v19 = vpop.f32.mrb[70].mxu0  ;;  %2241 = vmatmul.mubr.f32.gmra.mrb[98].mxu1 %v2089_v24  ;;  %3709 = vmatprep.mubr.f32.mxu0 %v2090_v32  ;;  %v2050_v53 = vmul.f32 %v1718_v33, %v5740_v38 }
 0x4f6   : > { %v2063_v30 = vsub.f32 %v3661_v19, %v2047_v6  ;;  %v1991_v29 = vpop.f32.mrb[71].mxu0  ;;  %3710 = vmatmul.mubr.f32.gmra.mrb[82].mxu0 %v2091_v14  ;;  %2246 = vmatprep.mubr.f32.mxu1 %v5721_v17  ;;  %v2093_v13 = vmax.f32 %v5349_v61, 0.0  ;;  %v1872_v61 = vadd.f32 %v5741_v28, %v5314_v62 }
 0x4f7   : > { %v2092_v47 = vmax.f32 %v2076_v4, 0.0  ;;  %v2062_v48 = vsub.f32 %v1991_v29, %v2046_v25  ;;  %v1867_v4 = vadd.f32 %v5742_v15, %v5314_v62 }
 0x4f8   : > { %v5363_v56 = vadd.f32 %v2063_v30, %v1852_v18  ;;  %v5743_v30 = vld [vmem:[#allocation17_spill] sm:$0xff] }
 0x4f9   : > { %v5368_v24 = vadd.f32 %v2062_v48, %v1847_v26  ;;  %v3664_v42 = vpop.f32.mrb[72].mxu0  ;;  %2247 = vmatmul.mubr.f32.gmra.mrb[100].mxu1 %v2090_v32  ;;  %3712 = vmatprep.mubr.f32.mxu0 %v2092_v47  ;;  %v2053_v29 = vmul.f32 %v1736_v8, %v5743_v30  ;;  %v5744_v26 = vld [vmem:[#allocation27_spill] sm:$0xff] }
 0x4fa   : > { %v2065_v7 = vsub.f32 %v3664_v42, %v2049_v21  ;;  %v2001_v3 = vpop.f32.mrb[73].mxu0  ;;  %3713 = vmatmul.mubr.f32.gmra.mrb[84].mxu0 %v2093_v13  ;;  %2252 = vmatprep.mubr.f32.mxu1 %v5721_v17  ;;  %v2095_v60 = vmax.f32 %v5363_v56, 0.0  ;;  %v1742_v48 = vadd.f32 %v5744_v26, %v5306_v12  ;;  %v5745_v21 = vld [vmem:[#allocation18_spill] sm:$0xff]  ;;  %v5748_v8 = vld [vmem:[#allocation19_spill] sm:$0xff] }
 0x4fb   : > { %v2094_v52 = vmax.f32 %v5368_v24, 0.0  ;;  %v2064_v58 = vsub.f32 %v2001_v3, %v2048_v54  ;;  %v2052_v33 = vmul.f32 %v1730_v45, %v5745_v21  ;;  %v5746_v24 = vld [vmem:[#allocation23_spill] sm:$0xff]  ;;  %v5749_v45 = vld [vmem:[#allocation20_spill] sm:$0xff] }
 0x4fc   : > { %v5380_v22 = vadd.f32 %v2065_v7, %v1862_v9  ;;  %v1882_v42 = vadd.f32 %v5746_v24, %v5314_v62  ;;  %v1877_v7 = vadd.f32 %v5747_v16, %v5314_v62  ;;  %v5752_v26 = vld [vmem:[#allocation7_spill] sm:$0xff] }
 0x4fd   : > { %v2080_v57 = vadd.f32 %v2064_v58, %v1857_v23  ;;  %v3667_v32 = vpop.f32.mrb[74].mxu0  ;;  %2253 = vmatmul.mubr.f32.gmra.mrb[102].mxu1 %v2091_v14  ;;  %3715 = vmatprep.mubr.f32.mxu0 %v2094_v52 }
 0x4fe   : > { %v2067_v6 = vsub.f32 %v3667_v32, %v2051_v49  ;;  %v2011_v51 = vpop.f32.mrb[75].mxu0  ;;  %3716 = vmatmul.mubr.f32.gmra.mrb[86].mxu0 %v2095_v60  ;;  %2258 = vmatprep.mubr.f32.mxu1 %v5721_v17  ;;  %v2097_v14 = vmax.f32 %v5380_v22, 0.0  ;;  %v5750_v32 = vld [vmem:[#allocation25_spill] sm:$0xff] }
 0x4ff   : > { %v2096_v19 = vmax.f32 %v2080_v57, 0.0  ;;  %v2066_v25 = vsub.f32 %v2011_v51, %v2050_v53  ;;  %v2054_v57 = vmul.f32 %v1742_v48, %v5749_v45  ;;  %v1892_v53 = vadd.f32 %v5750_v32, %v5314_v62 }
 0x500   : > { %v2083_v18 = vadd.f32 %v2067_v6, %v1872_v61  ;;  %v5751_v6 = vld [vmem:[#allocation26_spill] sm:$0xff] }
 0x501   : > { %v2082_v40 = vadd.f32 %v2066_v25, %v1867_v4  ;;  %v3670_v56 = vpop.f32.mrb[76].mxu0  ;;  %2259 = vmatmul.mubr.f32.gmra.mrb[104].mxu1 %v2092_v47  ;;  %3718 = vmatprep.mubr.f32.mxu0 %v2096_v19  ;;  %v2055_v47 = vmul.f32 %v1748_v59, %v5748_v8  ;;  %v1887_v51 = vadd.f32 %v5751_v6, %v5314_v62  ;;  %v5423_v62 = vld [vmem:[%s5670_s3 + $0x1b] ss:$8 sm:$0x7] }
 0x502   : > { %v2069_v54 = vsub.f32 %v3670_v56, %v2053_v29  ;;  %v2021_v9 = vpop.f32.mrb[77].mxu0  ;;  %3719 = vmatmul.mubr.f32.gmra.mrb[88].mxu0 %v2097_v14  ;;  %2264 = vmatprep.mubr.f32.mxu1 %v5721_v17  ;;  %v2099_v12 = vmax.f32 %v2083_v18, 0.0 }
 0x503   : > { %v2098_v3 = vmax.f32 %v2082_v40, 0.0  ;;  %v2068_v23 = vsub.f32 %v2021_v9, %v2052_v33 }
 0x504   : > { %v2085_v58 = vadd.f32 %v2069_v54, %v1882_v42 }
 0x505   : > { %v2084_v22 = vadd.f32 %v2068_v23, %v1877_v7  ;;  %v3673_v49 = vpop.f32.mrb[78].mxu0  ;;  %2265 = vmatmul.mubr.f32.gmra.mrb[106].mxu1 %v2093_v13  ;;  %3721 = vmatprep.mubr.f32.mxu0 %v2098_v3 }
 0x506   : > { %v2071_v28 = vsub.f32 %v3673_v49, %v2055_v47  ;;  %v2031_v61 = vpop.f32.mrb[79].mxu0  ;;  %3722 = vmatmul.mubr.f32.gmra.mrb[90].mxu0 %v2099_v12  ;;  %2270 = vmatprep.mubr.f32.mxu1 %v5721_v17  ;;  %v2101_v25 = vmax.f32 %v2085_v58, 0.0 }
 0x507   : > { %v2100_v15 = vmax.f32 %v2084_v22, 0.0  ;;  %v2070_v4 = vsub.f32 %v2031_v61, %v2054_v57 }
 0x508   : > { %v2087_v59 = vadd.f32 %v2071_v28, %v1892_v53 }
 0x509   : > { %v2086_v18 = vadd.f32 %v2070_v4, %v1887_v51  ;;  %2271 = vmatmul.mubr.f32.gmra.mrb[108].mxu1 %v2094_v52  ;;  %3724 = vmatprep.mubr.f32.mxu0 %v2100_v15 }
 0x50a   : > { %3725 = vmatmul.mubr.f32.gmra.mrb[92].mxu0 %v2101_v25  ;;  %2276 = vmatprep.mubr.f32.mxu1 %v5721_v17  ;;  %v2103_v29 = vmax.f32 %v2087_v59, 0.0 }
 0x50b   : > { %v2102_v13 = vmax.f32 %v2086_v18, 0.0 }
 0x50d   : > { %2277 = vmatmul.mubr.f32.gmra.mrb[110].mxu1 %v2095_v60  ;;  %3727 = vmatprep.mubr.f32.mxu0 %v2102_v13  ;;  %v5753_v60 = vld [vmem:[#allocation6_spill] sm:$0xff] }
 0x50e   : > { %3728 = vmatmul.mubr.f32.gmra.mrb[94].mxu0 %v2103_v29  ;;  %2282 = vmatprep.mubr.f32.mxu1 %v5721_v17 }
 0x50f   : > { %3762 = vmatprep.mubr.f32.mxu0 %v5752_v26 }
 0x511   : > { %2283 = vmatmul.mubr.f32.gmra.mrb[112].mxu1 %v2096_v19  ;;  %v5427_v19 = vrot.slane %v5423_v62, %v5753_v60 }
 0x512   : > { %2288 = vmatprep.mubr.f32.mxu1 %v5721_v17 }
 0x515   : > { %2289 = vmatmul.mubr.f32.gmra.mrb[114].mxu1 %v2097_v14 }
 0x516   : > { %2294 = vmatprep.mubr.f32.mxu1 %v5721_v17 }
 0x519   : > { %2295 = vmatmul.mubr.f32.gmra.mrb[116].mxu1 %v2098_v3 }
 0x51a   : > { %2300 = vmatprep.mubr.f32.mxu1 %v5721_v17 }
 0x51d   : > { %2301 = vmatmul.mubr.f32.gmra.mrb[118].mxu1 %v2099_v12 }
 0x51e   : > { %2306 = vmatprep.mubr.f32.mxu1 %v5721_v17 }
 0x521   : > { %2307 = vmatmul.mubr.f32.gmra.mrb[120].mxu1 %v2100_v15 }
 0x522   : > { %2312 = vmatprep.mubr.f32.mxu1 %v5721_v17 }
 0x525   : > { %2313 = vmatmul.mubr.f32.gmra.mrb[122].mxu1 %v2101_v25 }
 0x526   : > { %2318 = vmatprep.mubr.f32.mxu1 %v5721_v17 }
 0x529   : > { %2319 = vmatmul.mubr.f32.gmra.mrb[124].mxu1 %v2102_v13 }
 0x52a   : > { %2324 = vmatprep.mubr.f32.mxu1 %v5721_v17 }
 0x52d   : > { %2325 = vmatmul.mubr.f32.gmra.mrb[126].mxu1 %v2103_v29 }
 0x52e   : > { %3818 = vmatprep.mubr.msk.f32.mxu1 %vm4357_vm3, %v5721_v17 }
 0x5c4   : > { %v2236_v52 = vpop.f32.mrb[96].mxu1 }
 0x5c5   : > { %v5429_v14 = vpop.f32.mrb[97].mxu1  ;;  %v5431_v48 = vpop.f32.mrb[80].mxu0  ;;  %v2237_v33 = vadd.f32 %v2236_v52, %v5427_v19 }
 0x5c6   : > { %v5433_v40 = vpop.f32.mrb[81].mxu0 }
 0x5c8   : > { %v2242_v56 = vpop.f32.mrb[98].mxu1 }
 0x5c9   : > { %v2243_v24 = vadd.f32 %v2242_v56, %v5427_v19  ;;  %v5437_v42 = vpop.f32.mrb[99].mxu1  ;;  %v5439_v54 = vpop.f32.mrb[82].mxu0 }
 0x5ca   : > { %v5441_v9 = vpop.f32.mrb[83].mxu0 }
 0x5cb   : > { %v4179_v16 = vpack.c.bf16 %v2243_v24, %v2237_v33 }
 0x5cc   : > { %v2248_v7 = vpop.f32.mrb[100].mxu1 }
 0x5cd   : > { %v5443_v3 = vpop.f32.mrb[101].mxu1  ;;  %v5445_v23 = vpop.f32.mrb[84].mxu0  ;;  %4180 = vmatprep.subr.bf16.mxu0 %v4179_v16  ;;  %v2249_v47 = vadd.f32 %v2248_v7, %v5427_v19 }
 0x5ce   : > { %v5447_v12 = vpop.f32.mrb[85].mxu0  ;;  %4182 = vmatpush3.bf16.msra.mxu0 %v4179_v16 }
 0x5d0   : > { %v2254_v58 = vpop.f32.mrb[102].mxu1 }
 0x5d1   : > { %v2255_v22 = vadd.f32 %v2254_v58, %v5427_v19  ;;  %v5451_v49 = vpop.f32.mrb[103].mxu1  ;;  %v5453_v57 = vpop.f32.mrb[86].mxu0 }
 0x5d2   : > { %v5455_v32 = vpop.f32.mrb[87].mxu0 }
 0x5d3   : > { %v4183_v53 = vpack.c.bf16 %v2255_v22, %v2249_v47 }
 0x5d4   : > { %v2260_v28 = vpop.f32.mrb[104].mxu1 }
 0x5d5   : > { %v5457_v61 = vpop.f32.mrb[105].mxu1  ;;  %v5459_v6 = vpop.f32.mrb[88].mxu0  ;;  %4184 = vmatprep.subr.bf16.mxu0 %v4183_v53  ;;  %v2261_v4 = vadd.f32 %v2260_v28, %v5427_v19 }
 0x5d6   : > { %v5461_v51 = vpop.f32.mrb[89].mxu0  ;;  %4186 = vmatpush3.bf16.msra.mxu0 %v4183_v53 }
 0x5d8   : > { %v2266_v15 = vpop.f32.mrb[106].mxu1 }
 0x5d9   : > { %v2267_v25 = vadd.f32 %v2266_v15, %v5427_v19  ;;  %v5465_v59 = vpop.f32.mrb[107].mxu1  ;;  %v5467_v18 = vpop.f32.mrb[90].mxu0 }
 0x5da   : > { %v5469_v13 = vpop.f32.mrb[91].mxu0 }
 0x5db   : > { %v4187_v29 = vpack.c.bf16 %v2267_v25, %v2261_v4 }
 0x5dc   : > { %v2272_v26 = vpop.f32.mrb[108].mxu1 }
 0x5dd   : > { %v5471_v52 = vpop.f32.mrb[109].mxu1  ;;  %v5473_v60 = vpop.f32.mrb[92].mxu0  ;;  %4188 = vmatprep.subr.bf16.mxu0 %v4187_v29  ;;  %v2273_v24 = vadd.f32 %v2272_v26, %v5427_v19 }
 0x5de   : > { %5754 = vst [vmem:[#allocation15_spill] sm:$0xff] %v5473_v60  ;;  %v5475_v56 = vpop.f32.mrb[93].mxu0  ;;  %4190 = vmatpush3.bf16.msra.mxu0 %v4187_v29 }
 0x5df   : > { %5755 = vst [vmem:[#allocation16_spill] sm:$0xff] %v5475_v56 }
 0x5e0   : > { %v2278_v33 = vpop.f32.mrb[110].mxu1 }
 0x5e1   : > { %v2279_v16 = vadd.f32 %v2278_v33, %v5427_v19  ;;  %v5479_v7 = vpop.f32.mrb[111].mxu1  ;;  %v5481_v58 = vpop.f32.mrb[94].mxu0 }
 0x5e2   : > { %5756 = vst [vmem:[#allocation21_spill] sm:$0xff] %v5481_v58  ;;  %v5483_v47 = vpop.f32.mrb[95].mxu0 }
 0x5e3   : > { %5757 = vst [vmem:[#allocation22_spill] sm:$0xff] %v5483_v47  ;;  %v4191_v22 = vpack.c.bf16 %v2279_v16, %v2273_v24 }
 0x5e4   : > { %v2284_v53 = vpop.f32.mrb[112].mxu1 }
 0x5e5   : > { %v5485_v28 = vpop.f32.mrb[113].mxu1  ;;  %4192 = vmatprep.subr.bf16.mxu0 %v4191_v22  ;;  %v2285_v4 = vadd.f32 %v2284_v53, %v5427_v19 }
 0x5e6   : > { %4194 = vmatpush3.bf16.msra.mxu0 %v4191_v22 }
 0x5e8   : > { %v2290_v15 = vpop.f32.mrb[114].mxu1 }
 0x5e9   : > { %v2291_v25 = vadd.f32 %v2290_v15, %v5427_v19  ;;  %v5489_v29 = vpop.f32.mrb[115].mxu1 }
 0x5eb   : > { %v4195_v26 = vpack.c.bf16 %v2291_v25, %v2285_v4 }
 0x5ec   : > { %v2296_v33 = vpop.f32.mrb[116].mxu1 }
 0x5ed   : > { %v5491_v45 = vpop.f32.mrb[117].mxu1  ;;  %4196 = vmatprep.subr.bf16.mxu0 %v4195_v26  ;;  %v2297_v24 = vadd.f32 %v2296_v33, %v5427_v19 }
 0x5ee   : > { %4198 = vmatpush3.bf16.msra.mxu0 %v4195_v26 }
 0x5f0   : > { %v2302_v47 = vpop.f32.mrb[118].mxu1 }
 0x5f1   : > { %v2303_v16 = vadd.f32 %v2302_v47, %v5427_v19  ;;  %v5495_v58 = vpop.f32.mrb[119].mxu1 }
 0x5f3   : > { %v4199_v22 = vpack.c.bf16 %v2303_v16, %v2297_v24 }
 0x5f4   : > { %v2308_v8 = vpop.f32.mrb[120].mxu1 }
 0x5f5   : > { %v5497_v53 = vpop.f32.mrb[121].mxu1  ;;  %4200 = vmatprep.subr.bf16.mxu0 %v4199_v22  ;;  %v2309_v4 = vadd.f32 %v2308_v8, %v5427_v19  ;;  %v5758_v8 = vld [vmem:[#allocation8_spill] sm:$0xff] }
 0x5f6   : > { %4202 = vmatpush3.bf16.msra.mxu0 %v4199_v22 }
 0x5f8   : > { %v2314_v15 = vpop.f32.mrb[122].mxu1 }
 0x5f9   : > { %v2315_v25 = vadd.f32 %v2314_v15, %v5427_v19  ;;  %v5501_v56 = vpop.f32.mrb[123].mxu1  ;;  %v2763_v15 = vld [vmem:[#allocation2 + $0x480] sm:$0xff] }
 0x5fb   : > { %v4203_v26 = vpack.c.bf16 %v2315_v25, %v2309_v4  ;;  %v2764_v4 = vld [vmem:[#allocation2 + $0x498] sm:$0xff]  ;;  %v2765_v25 = vld [vmem:[#allocation2 + $0x4b0] sm:$0xff] }
 0x5fc   : > { %v2320_v60 = vpop.f32.mrb[124].mxu1 }
 0x5fd   : > { %v5503_v33 = vpop.f32.mrb[125].mxu1  ;;  %4204 = vmatprep.subr.bf16.mxu0 %v4203_v26  ;;  %v2321_v24 = vadd.f32 %v2320_v60, %v5427_v19  ;;  %v5763_v60 = vld [vmem:[#allocation13_spill] sm:$0xff] }
 0x5fe   : > { %4206 = vmatpush3.bf16.msra.mxu0 %v4203_v26  ;;  %v4236_v26 = vpack.c.bf16 %v2764_v4, %v2763_v15  ;;  %v2774_v15 = vld [vmem:[#allocation2 + $0x588] sm:$0xff] }
 0x600   : > { %v2326_v47 = vpop.f32.mrb[126].mxu1 }
 0x601   : > { %v2327_v16 = vadd.f32 %v2326_v47, %v5427_v19  ;;  %v5507_v21 = vpop.f32.mrb[127].mxu1  ;;  %v5759_v19 = vld [vmem:[#allocation9_spill] sm:$0xff]  ;;  %v2766_v47 = vld [vmem:[#allocation2 + $0x4c8] sm:$0xff] }
 0x603   : > { %v4207_v22 = vpack.c.bf16 %v2327_v16, %v2321_v24  ;;  %v4239_v24 = vpack.c.bf16 %v2766_v47, %v2765_v25  ;;  %v2767_v16 = vld [vmem:[#allocation2 + $0x4e0] sm:$0xff] }
 0x604   : > { %v2775_v25 = vld [vmem:[#allocation2 + $0x5a0] sm:$0xff] }
 0x605   : > { %4208 = vmatprep.subr.bf16.mxu0 %v4207_v22 }
 0x606   : > { %4210 = vmatpush3.bf16.msra.mxu0 %v4207_v22  ;;  %v2768_v22 = vld [vmem:[#allocation2 + $0x4f8] sm:$0xff] }
 0x609   : > { %3763 = vmatmul.mubr.f32.vlgmr.msra.gmra.mrb[96].mxu0 %v4882_v63  ;;  %v5760_v63 = vld [vmem:[#allocation10_spill] sm:$0xff] }
 0x60a   : > { %3765 = vmatprep.mubr.f32.mxu0 %v4887_v5  ;;  %v5761_v5 = vld [vmem:[#allocation11_spill] sm:$0xff] }
 0x60d   : > { %3766 = vmatmul.mubr.f32.gmra.mrb[98].mxu0 %v4890_v20  ;;  %v5762_v20 = vld [vmem:[#allocation12_spill] sm:$0xff] }
 0x60e   : > { %3768 = vmatprep.mubr.f32.mxu0 %v4893_v27  ;;  %v5764_v27 = vld [vmem:[#allocation14_spill] sm:$0xff] }
 0x611   : > { %3769 = vmatmul.mubr.f32.gmra.mrb[100].mxu0 %v4896_v34  ;;  %v4356_v34 = vmov 0.0|0.0  }
 0x612   : > { %3771 = vmatprep.mubr.f32.mxu0 %v4899_v31  ;;  %4211 = vmatprep.subr.bf16.mxu1 %v4356_v34  ;;  %v5527_v31 = vld [vmem:[%s4447_s16 + $0x2] ss:$0 sm:$0xff] }
 0x613   : > { %4235 = vmatprep.subr.bf16.mxu0 %v4356_v34 }
 0x614   : > { %4237 = vmatpush3.bf16.msra.mxu0 %v4236_v26  ;;  %v2776_v26 = vld [vmem:[#allocation2 + $0x5b8] sm:$0xff] }
 0x615   : > { %3772 = vmatmul.mubr.f32.gmra.mrb[102].mxu0 %v4902_v39  ;;  %v5765_v39 = vld [vmem:[#allocation5_spill] sm:$0xff]  ;;  %4238 = vmatprep.subr.bf16.mxu0 %v4356_v34  ;;  %v4254_v47 = vpack.c.bf16 %v2776_v26, %v2775_v25 }
 0x616   : > { %3774 = vmatprep.mubr.f32.mxu0 %v4906_v36  ;;  %vm2685_vm4 = vcmp.eq.s32.totalorder %v5765_v39, %v5527_v31  ;;  %v2786_v39 = vld [vmem:[#allocation2 + $0x6a8] sm:$0xff] }
 0x617   : > { %v3158_v36 = vsel %vm2685_vm4, 1.0, %v5721_v17 }
 0x618   : > { %2688 = vadd.xlane.f32.xlu0 %v3158_v36  ;;  %4240 = vmatpush3.bf16.msra.mxu0 %v4239_v24  ;;  %v5548_v24 = vrot.slane %v5423_v62, %v4450_v2 }
 0x619   : > { %3775 = vmatmul.mubr.f32.gmra.mrb[104].mxu0 %v5758_v8  ;;  %v4242_v8 = vpack.c.bf16 %v2768_v22, %v2767_v16  ;;  %4241 = vmatprep.subr.bf16.mxu0 %v4356_v34 }
 0x61a   : > { %3777 = vmatprep.mubr.f32.mxu0 %v5759_v19  ;;  %v2769_v19 = vld [vmem:[#allocation2 + $0x510] sm:$0xff]  ;;  %v2245_v16 = vadd.f32 %v5437_v42, %v5548_v24  ;;  %v2239_v22 = vadd.f32 %v5429_v14, %v5548_v24 }
 0x61c   : > { %4243 = vmatpush3.bf16.msra.mxu0 %v4242_v8  ;;  %v5556_v8 = vrot.slane %v5423_v62, %v5041_v37 }
 0x61d   : > { %3778 = vmatmul.mubr.f32.gmra.mrb[106].mxu0 %v5760_v63  ;;  %v2770_v63 = vld [vmem:[#allocation2 + $0x528] sm:$0xff]  ;;  %4244 = vmatprep.subr.bf16.mxu0 %v4356_v34 }
 0x61e   : > { %3780 = vmatprep.mubr.f32.mxu0 %v5761_v5  ;;  %v4245_v5 = vpack.c.bf16 %v2770_v63, %v2769_v19  ;;  %v2257_v19 = vadd.f32 %v5451_v49, %v5548_v24  ;;  %v2622_v63 = vmul.f32 %v2245_v16, %v5049_v43  ;;  %v2403_v42 = vadd.f32 %v5431_v48, %v5556_v8 }
 0x61f   : > { %v2398_v37 = vadd.f32 %v5433_v40, %v5556_v8  ;;  %v2269_v49 = vadd.f32 %v5465_v59, %v5548_v24  ;;  %v2413_v48 = vadd.f32 %v5439_v54, %v5556_v8  ;;  %v2408_v26 = vadd.f32 %v5441_v9, %v5556_v8 }
 0x620   : > { %4246 = vmatpush3.bf16.msra.mxu0 %v4245_v5  ;;  %v2251_v5 = vadd.f32 %v5443_v3, %v5548_v24  ;;  %v2624_v43 = vmul.f32 %v2257_v19, %v5060_v55  ;;  %v2263_v3 = vadd.f32 %v5457_v61, %v5548_v24  ;;  %v2281_v55 = vadd.f32 %v5479_v7, %v5548_v24 }
 0x621   : > { %3781 = vmatmul.mubr.f32.gmra.mrb[108].mxu0 %v5762_v20  ;;  %4247 = vmatprep.subr.bf16.mxu0 %v4356_v34  ;;  %v2771_v20 = vld [vmem:[#allocation2 + $0x540] sm:$0xff]  ;;  %v2626_v61 = vmul.f32 %v2269_v49, %v5072_v1  ;;  %v2418_v7 = vadd.f32 %v5447_v12, %v5556_v8  ;;  %v2293_v1 = vadd.f32 %v5489_v29, %v5548_v24 }
 0x622   : > { %3783 = vmatprep.mubr.f32.mxu0 %v5763_v60  ;;  %v2772_v60 = vld [vmem:[#allocation2 + $0x558] sm:$0xff]  ;;  %v2433_v12 = vadd.f32 %v5453_v57, %v5556_v8  ;;  %v2428_v29 = vadd.f32 %v5455_v32, %v5556_v8  ;;  %v2443_v32 = vadd.f32 %v5459_v6, %v5556_v8 }
 0x623   : > { %v4248_v36 = vpack.c.bf16 %v2772_v60, %v2771_v20  ;;  %v2621_v20 = vmul.f32 %v2239_v22, %v5739_v44 }
 0x625   : > { %3784 = vmatmul.mubr.f32.gmra.mrb[110].mxu0 %v5764_v27  ;;  %v2773_v27 = vld [vmem:[#allocation2 + $0x570] sm:$0xff] }
 0x626   : > { %3853 = vmatprep.mubr.msk.f32.mxu0 %vm4357_vm3, %v5721_v17  ;;  %4249 = vmatpush3.bf16.msra.mxu0 %v4248_v36  ;;  %v4251_v4 = vpack.c.bf16 %v2774_v15, %v2773_v27  ;;  %v2623_v15 = vmul.f32 %v2251_v5, %v5043_v41  ;;  %v2275_v41 = vadd.f32 %v5471_v52, %v5548_v24 }
 0x627   : > { %4250 = vmatprep.subr.bf16.mxu0 %v4356_v34  ;;  %v2423_v5 = vadd.f32 %v5445_v23, %v5556_v8 }
 0x628   : > { %v2627_v49 = vmul.f32 %v2275_v41, %v5091_v11  ;;  %v2299_v11 = vadd.f32 %v5491_v45, %v5548_v24  ;;  %v2317_v45 = vadd.f32 %v5501_v56, %v5548_v24  ;;  %v2448_v56 = vadd.f32 %v5469_v13, %v5556_v8  ;;  %v5767_v13 = vld [vmem:[#allocation15_spill] sm:$0xff] }
 0x62a   : > { %4252 = vmatpush3.bf16.msra.mxu0 %v4251_v4 }
 0x62b   : > { %4253 = vmatprep.subr.bf16.mxu0 %v4356_v34 }
 0x62e   : > { %4255 = vmatpush3.bf16.msra.mxu0 %v4254_v47 }
 0x62f   : > { %4256 = vmatprep.subr.bf16.mxu0 %v4356_v34 }
 0x6dc   : > { %v3764_v2 = vpop.f32.mrb[96].mxu0 }
 0x6dd   : > { %v2638_v60 = vsub.f32 %v3764_v2, %v2622_v63  ;;  %v2542_v14 = vpop.f32.mrb[97].mxu0  ;;  %v2625_v63 = vmul.f32 %v2263_v3, %v5075_v10  ;;  %v2287_v10 = vadd.f32 %v5485_v28, %v5548_v24  ;;  %v2305_v28 = vadd.f32 %v5495_v58, %v5548_v24 }
 0x6de   : > { %v2637_v62 = vsub.f32 %v2542_v14, %v2621_v20  ;;  %v2628_v14 = vmul.f32 %v2281_v55, %v5088_v46  ;;  %v2438_v58 = vadd.f32 %v5461_v51, %v5556_v8  ;;  %v2453_v51 = vadd.f32 %v5467_v18, %v5556_v8 }
 0x6df   : > { %v2654_v27 = vadd.f32 %v2638_v60, %v2403_v42 }
 0x6e0   : > { %v2653_v36 = vadd.f32 %v2637_v62, %v2398_v37  ;;  %v3767_v44 = vpop.f32.mrb[98].mxu0 }
 0x6e1   : > { %v2670_v4 = vmax.f32 %v2654_v27, 0.0  ;;  %v2640_v25 = vsub.f32 %v3767_v44, %v2624_v43  ;;  %v2552_v40 = vpop.f32.mrb[99].mxu0 }
 0x6e2   : > { %v2669_v59 = vmax.f32 %v2653_v36, 0.0  ;;  %v2639_v47 = vsub.f32 %v2552_v40, %v2623_v15  ;;  %v2630_v15 = vmul.f32 %v2293_v1, %v5106_v50  ;;  %v2463_v1 = vadd.f32 %v5767_v13, %v5556_v8  ;;  %v2793_v13 = vld [vmem:[#allocation2 + $0x750] sm:$0xff] }
 0x6e3   : > { %v2656_v16 = vadd.f32 %v2640_v25, %v2413_v48  ;;  %v2629_v25 = vmul.f32 %v2287_v10, %v5109_v0  ;;  %v2311_v0 = vadd.f32 %v5497_v53, %v5548_v24  ;;  %v2329_v53 = vadd.f32 %v5507_v21, %v5548_v24  ;;  %v5768_v21 = vld [vmem:[#allocation16_spill] sm:$0xff] }
 0x6e4   : > { %v4212_v22 = vpack.c.bf16 %v2670_v4, %v2669_v59  ;;  %v2655_v19 = vadd.f32 %v2639_v47, %v2408_v26  ;;  %v3770_v54 = vpop.f32.mrb[100].mxu0 }
 0x6e5   : > { %v2672_v9 = vmax.f32 %v2656_v16, 0.0  ;;  %v2642_v2 = vsub.f32 %v3770_v54, %v2626_v61  ;;  %v2562_v20 = vpop.f32.mrb[101].mxu0  ;;  %v2632_v16 = vmul.f32 %v2305_v28, %v5124_v35 }
 0x6e6   : > { %v2671_v42 = vmax.f32 %v2655_v19, 0.0  ;;  %v2641_v60 = vsub.f32 %v2562_v20, %v2625_v63  ;;  %4213 = vmatpush3.bf16.msra.mxu1 %v4212_v22  ;;  %v2631_v22 = vmul.f32 %v2299_v11, %v5740_v38  ;;  %v2323_v38 = vadd.f32 %v5503_v33, %v5548_v24 }
 0x6e7   : > { %v2658_v52 = vadd.f32 %v2642_v2, %v2423_v5  ;;  %4214 = vmatprep.subr.bf16.mxu1 %v4356_v34  ;;  %v2634_v2 = vmul.f32 %v2317_v45, %v5743_v30  ;;  %v2779_v45 = vld [vmem:[#allocation2 + $0x600] sm:$0xff] }
 0x6e8   : > { %v4215_v23 = vpack.c.bf16 %v2672_v9, %v2671_v42  ;;  %v2657_v37 = vadd.f32 %v2641_v60, %v2418_v7  ;;  %v3773_v62 = vpop.f32.mrb[102].mxu0  ;;  %v5766_v42 = vld [vmem:[#allocation18_spill] sm:$0xff] }
 0x6e9   : > { %v2674_v27 = vmax.f32 %v2658_v52, 0.0  ;;  %v2644_v43 = vsub.f32 %v3773_v62, %v2628_v14  ;;  %v2572_v3 = vpop.f32.mrb[103].mxu0  ;;  %v2633_v60 = vmul.f32 %v2311_v0, %v5766_v42 }
 0x6ea   : > { %v2673_v46 = vmax.f32 %v2657_v37, 0.0  ;;  %v2643_v36 = vsub.f32 %v2572_v3, %v2627_v49  ;;  %4216 = vmatpush3.bf16.msra.mxu1 %v4215_v23  ;;  %v2458_v23 = vadd.f32 %v5768_v21, %v5556_v8  ;;  %v5769_v49 = vld [vmem:[#allocation19_spill] sm:$0xff] }
 0x6eb   : > { %v2660_v44 = vadd.f32 %v2644_v43, %v2433_v12  ;;  %4217 = vmatprep.subr.bf16.mxu1 %v4356_v34  ;;  %v2636_v33 = vmul.f32 %v2329_v53, %v5769_v49  ;;  %v5770_v43 = vld [vmem:[#allocation20_spill] sm:$0xff]  ;;  %v2791_v53 = vld [vmem:[#allocation2 + $0x720] sm:$0xff] }
 0x6ec   : > { %v4218_v57 = vpack.c.bf16 %v2674_v27, %v2673_v46  ;;  %v2659_v48 = vadd.f32 %v2643_v36, %v2428_v29  ;;  %v3776_v4 = vpop.f32.mrb[104].mxu0  ;;  %v2635_v3 = vmul.f32 %v2323_v38, %v5770_v43  ;;  %v5771_v29 = vld [vmem:[#allocation21_spill] sm:$0xff]  ;;  %v2689_v38 = vpop.xlane.xlu0 %2688 }
 0x6ed   : > { %v2676_v40 = vmax.f32 %v2660_v44, 0.0  ;;  %v2646_v26 = vsub.f32 %v3776_v4, %v2630_v15  ;;  %v2582_v59 = vpop.f32.mrb[105].mxu0  ;;  %v2473_v46 = vadd.f32 %v5771_v29, %v5556_v8  ;;  %v5772_v15 = vld [vmem:[#allocation22_spill] sm:$0xff] }
 0x6ee   : > { %v2675_v50 = vmax.f32 %v2659_v48, 0.0  ;;  %v2645_v47 = vsub.f32 %v2582_v59, %v2629_v25  ;;  %4219 = vmatpush3.bf16.msra.mxu1 %v4218_v57  ;;  %v2468_v11 = vadd.f32 %v5772_v15, %v5556_v8  ;;  %v2777_v8 = vld [vmem:[#allocation2 + $0x5d0] sm:$0xff] }
 0x6ef   : > { %v2662_v55 = vadd.f32 %v2646_v26, %v2443_v32  ;;  %4220 = vmatprep.subr.bf16.mxu1 %v4356_v34 }
 0x6f0   : > { %v4221_v6 = vpack.c.bf16 %v2676_v40, %v2675_v50  ;;  %v2661_v61 = vadd.f32 %v2645_v47, %v2438_v58  ;;  %v3779_v41 = vpop.f32.mrb[106].mxu0  ;;  %v4358_v58 = vmov 1.0   ;;  %v2778_v50 = vld [vmem:[#allocation2 + $0x5e8] sm:$0xff] }
 0x6f1   : > { %v2678_v19 = vmax.f32 %v2662_v55, 0.0  ;;  %v2648_v54 = vsub.f32 %v3779_v41, %v2632_v16  ;;  %v2592_v63 = vpop.f32.mrb[107].mxu0  ;;  %v4257_v47 = vpack.c.bf16 %v2778_v50, %v2777_v8  ;;  %v2780_v55 = vld [vmem:[#allocation2 + $0x618] sm:$0xff]  ;;  %v2781_v16 = vld [vmem:[#allocation2 + $0x630] sm:$0xff]  ;;  %v2783_v41 = vld [vmem:[#allocation2 + $0x660] sm:$0xff] }
 0x6f2   : > { %v2677_v35 = vmax.f32 %v2661_v61, 0.0  ;;  %v2647_v5 = vsub.f32 %v2592_v63, %v2631_v22  ;;  %4222 = vmatpush3.bf16.msra.mxu1 %v4221_v6  ;;  %v4260_v0 = vpack.c.bf16 %v2780_v55, %v2779_v45  ;;  %v2782_v6 = vld [vmem:[#allocation2 + $0x648] sm:$0xff]  ;;  %v2784_v22 = vld [vmem:[#allocation2 + $0x678] sm:$0xff] }
 0x6f3   : > { %v2664_v9 = vadd.f32 %v2648_v54, %v2453_v51  ;;  %4223 = vmatprep.subr.bf16.mxu1 %v4356_v34  ;;  %4258 = vmatpush3.bf16.msra.mxu0 %v4257_v47  ;;  %v4263_v61 = vpack.c.bf16 %v2782_v6, %v2781_v16  ;;  %v4266_v31 = vpack.c.bf16 %v2784_v22, %v2783_v41  ;;  %v2788_v54 = vld [vmem:[#allocation2 + $0x6d8] sm:$0xff] }
 0x6f4   : > { %v4224_v18 = vpack.c.bf16 %v2678_v19, %v2677_v35  ;;  %v2663_v20 = vadd.f32 %v2647_v5, %v2448_v56  ;;  %v3782_v7 = vpop.f32.mrb[108].mxu0  ;;  %v2787_v19 = vld [vmem:[#allocation2 + $0x6c0] sm:$0xff]  ;;  %v2789_v56 = vld [vmem:[#allocation2 + $0x6f0] sm:$0xff]  ;;  %v2790_v35 = vld [vmem:[#allocation2 + $0x708] sm:$0xff] }
 0x6f5   : > { %v2680_v52 = vmax.f32 %v2664_v9, 0.0  ;;  %v2650_v14 = vsub.f32 %v3782_v7, %v2634_v2  ;;  %v2602_v10 = vpop.f32.mrb[109].mxu0  ;;  %v4272_v63 = vpack.c.bf16 %v2788_v54, %v2787_v19  ;;  %v4275_v5 = vpack.c.bf16 %v2790_v35, %v2789_v56  ;;  %v2792_v9 = vld [vmem:[#allocation2 + $0x738] sm:$0xff] }
 0x6f6   : > { %v2679_v30 = vmax.f32 %v2663_v20, 0.0  ;;  %v2649_v37 = vsub.f32 %v2602_v10, %v2633_v60  ;;  %4225 = vmatpush3.bf16.msra.mxu1 %v4224_v18  ;;  %v4278_v2 = vpack.c.bf16 %v2792_v9, %v2791_v53  ;;  %v2690_v18 = vmax.f32 %v2689_v38, 1.0 }
 0x6f7   : > { %v2666_v62 = vadd.f32 %v2650_v14, %v2463_v1  ;;  %4226 = vmatprep.subr.bf16.mxu1 %v4356_v34  ;;  %v2794_v1 = vld [vmem:[#allocation2 + $0x768] sm:$0xff]  ;;  %v2795_v14 = vld [vmem:[%s5670_s3 + $0x1c] ss:$0 sm:$0xff] }
 0x6f8   : > { %v4227_v24 = vpack.c.bf16 %v2680_v52, %v2679_v30  ;;  %v2665_v12 = vadd.f32 %v2649_v37, %v2458_v23  ;;  %v3785_v27 = vpop.f32.mrb[110].mxu0  ;;  %4309 = vrcp.f32 %v2690_v18  ;;  %v4281_v52 = vpack.c.bf16 %v2794_v1, %v2793_v13  ;;  %v2796_v30 = vld [vmem:[%s5670_s3 + $0x1d] ss:$0 sm:$0xff] }
 0x6f9   : > { %v2682_v36 = vmax.f32 %v2666_v62, 0.0  ;;  %v2652_v28 = vsub.f32 %v3785_v27, %v2636_v33  ;;  %v2612_v44 = vpop.f32.mrb[111].mxu0 }
 0x6fa   : > { %v2681_v57 = vmax.f32 %v2665_v12, 0.0  ;;  %v2651_v48 = vsub.f32 %v2612_v44, %v2635_v3  ;;  %4228 = vmatpush3.bf16.msra.mxu1 %v4227_v24 }
 0x6fb   : > { %v2668_v4 = vadd.f32 %v2652_v28, %v2473_v46  ;;  %4229 = vmatprep.subr.bf16.mxu1 %v4356_v34 }
 0x6fc   : > { %v4230_v25 = vpack.c.bf16 %v2682_v36, %v2681_v57  ;;  %v2667_v32 = vadd.f32 %v2651_v48, %v2468_v11 }
 0x6fd   : > { %v2684_v40 = vmax.f32 %v2668_v4, 0.0 }
 0x6fe   : > { %v2683_v26 = vmax.f32 %v2667_v32, 0.0  ;;  %4231 = vmatpush3.bf16.msra.mxu1 %v4230_v25 }
 0x6ff   : > { %4232 = vmatprep.subr.bf16.mxu1 %v4356_v34 }
 0x700   : > { %v4233_v59 = vpack.c.bf16 %v2684_v40, %v2683_v26 }
 0x702   : > { %4234 = vmatpush3.bf16.msra.mxu1 %v4233_v59  ;;  %v4310_v20 = vpop.eup %4309 }
 0x703   : > { %4259 = vmatprep.subr.bf16.mxu1 %v4356_v34 }
 0x705   : > { %3819 = vmatmul.mubr.msk.f32.vlgmr.msra.gmra.mrb[128].mxu1 %vm2685_vm4, %v4358_v58 }
 0x706   : > { %3888 = vmatprep.mubr.msk.f32.mxu1 %vm4357_vm3, %v5721_v17  ;;  %4261 = vmatpush3.bf16.msra.mxu1 %v4260_v0  ;;  %v2785_v17 = vld [vmem:[#allocation2 + $0x690] sm:$0xff] }
 0x707   : > { %4262 = vmatprep.subr.bf16.mxu1 %v4356_v34  ;;  %v4269_v51 = vpack.c.bf16 %v2786_v39, %v2785_v17 }
 0x70a   : > { %4264 = vmatpush3.bf16.msra.mxu1 %v4263_v61 }
 0x70b   : > { %4265 = vmatprep.subr.bf16.mxu1 %v4356_v34 }
 0x70e   : > { %4267 = vmatpush3.bf16.msra.mxu1 %v4266_v31 }
 0x70f   : > { %4268 = vmatprep.subr.bf16.mxu1 %v4356_v34 }
 0x712   : > { %4270 = vmatpush3.bf16.msra.mxu1 %v4269_v51 }
 0x713   : > { %4271 = vmatprep.subr.bf16.mxu1 %v4356_v34 }
 0x716   : > { %4273 = vmatpush3.bf16.msra.mxu1 %v4272_v63 }
 0x717   : > { %4274 = vmatprep.subr.bf16.mxu1 %v4356_v34 }
 0x71a   : > { %4276 = vmatpush3.bf16.msra.mxu1 %v4275_v5 }
 0x71b   : > { %4277 = vmatprep.subr.bf16.mxu1 %v4356_v34 }
 0x71e   : > { %4279 = vmatpush3.bf16.msra.mxu1 %v4278_v2 }
 0x71f   : > { %4280 = vmatprep.subr.bf16.mxu1 %v4356_v34 }
 0x722   : > { %4282 = vmatpush3.bf16.msra.mxu1 %v4281_v52 }
 0x7d8   : > { %v2757_v7 = vpop.f32.mrb[128].mxu1 }
 0x7d9   : > { %v2762_v42 = vmul.f32 %v4310_v20, %v2757_v7  ;;  %v3820_v60 = vpop.f32.mrb[129].mxu1 }
 0x7db   : > { %3854 = vmatmul.mubr.f32.vlgmr.msra.gmra.mrb[112].mxu0 %v2762_v42 }
 0x8ae   : > { %v2863_v10 = vpop.f32.mrb[112].mxu0 }
 0x8af   : > { %v2864_v21 = vadd.f32 %v2863_v10, %v2795_v14  ;;  %v3855_v34 = vpop.f32.mrb[113].mxu0 }
 0x8b1   : > { %v2867_v23 = vmax.f32 %v2864_v21, 0.0 }
 0x8b3   : > { %3889 = vmatmul.mubr.f32.vlgmr.msra.gmra.mrb[130].mxu1 %v2867_v23 }
 0x986   : > { %v2934_v37 = vpop.f32.mrb[130].mxu1 }
 0x987   : > { %v2935_v62 = vadd.f32 %v2934_v37, %v2796_v30  ;;  %v3890_v49 = vpop.f32.mrb[131].mxu1 }
 0x989   : > { %2938 = vst [vmem:[%s279_s17] sm:$0xff] %v2935_v62 }
 0x98a PF: > { %s16_s18 = sadd.s32 1, %s4349_s18  }
 0x98b   : > { %p13_p5 = scmp.ge.s32.totalorder %s16_s18, 4  }
 0x98d   :  { %15 = sbr.rel (!%p13_p5) target bundleno = 1 (0x1), region = 85 }
 0x994   :  { %2958 = vsyncpa [#allocation3], 1 }
 0x995   :  { %2960 = vsyncpa [#allocation3 + $0x1], 1 }

</bundles_post_ra>
